<compile_context>
chip_gen: v7x
topology: tpu7x:2x2x1
jax: 0.10.0
libtpu: 0.0.40
codegen_flags: <defaults>
</compile_context>

<pallas_src>
import jax
import jax.numpy as jnp
from jax.experimental import pallas as pl
from jax.experimental.pallas import tpu as pltpu


PARAM_ORDER = [
    "ln_g", "ln_b",
    "wp", "bp",
    "wcc", "bcc",      # fused [forward_conv1d | backward_conv1d] (kernel_size=1)
    "wdbc",            # fused [wdelta @ wdt | wB | wC]  (delta low-rank folded)
    "bdt",
    "at_neg",          # -exp(A_log)^T, precomputed host-side, shape (N, D)
    "dpar",
]


def _softplus(v):
    # torch.nn.Softplus (beta=1); logaddexp is the numerically stable form.
    return jnp.logaddexp(v, 0.0)


def vim_block_kernel(
    x_ref, ln_g_ref, ln_b_ref,
    wp_ref, bp_ref,
    wcc_ref, bcc_ref,
    wdbc_ref, bdt_ref,
    at_ref, dpar_ref,
    o_ref,
    st1_s, st2_s,
):
    t = pl.program_id(1)                            # sequence-tile index
    f32 = jnp.float32
    bf16 = jnp.bfloat16

    x = x_ref[0]                                    # (TS, D) — one tile of one batch elem
    TS, D = x.shape
    N = at_ref.shape[0]                             # d_state

    # ---- LayerNorm over D (eps=1e-5, biased variance, like torch) ----
    mu = jnp.mean(x, axis=-1, keepdims=True)
    xc = x - mu
    var = jnp.mean(xc * xc, axis=-1, keepdims=True)
    xn = xc * jax.lax.rsqrt(var + 1e-5) * ln_g_ref[...] + ln_b_ref[...]

    # ---- shared projection: z1 = proj(norm(x)) and the x-branch are identical ----
    xp = jnp.dot(xn.astype(bf16), wp_ref[...], preferred_element_type=f32) + bp_ref[...]
    z = xp * jax.nn.sigmoid(xp)                     # SiLU(z1)

    # ---- fused forward/backward conv1d (k=1) as one lane-dense matmul ----
    uc = _softplus(jnp.dot(xp.astype(bf16), wcc_ref[...],
                           preferred_element_type=f32) + bcc_ref[...])   # (TS, 2D)
    u1 = uc[:, :D]                                  # forward branch input
    u2 = uc[:, D:]                                  # backward branch input
    u_cat = jnp.concatenate([u1, u2], axis=0)       # (2TS, D): rows [fwd; bwd]

    # ---- fused [delta | B | C] projection (delta low-rank already folded) ----
    dbc = jnp.dot(u_cat.astype(bf16), wdbc_ref[...],
                  preferred_element_type=f32)       # (2TS, D + 2N)
    delta = _softplus(dbc[:, :D] + bdt_ref[...])    # (2TS, D)
    du = delta * u_cat                              # (2TS, D)

    # single per-tile transpose: (2TS, 2N) -> (2N, 2TS); per-step (N,1) columns
    # are then cheap static lane slices (no per-chunk XLU transposes).
    bcT = dbc[:, D:].T                              # rows [0:N] = B^T, [N:2N] = C^T

    AT = at_ref[...]                                # (N, D) == -exp(A_log)^T

    # ---- selective scan: state persists across S-tiles in VMEM scratch ----
    @pl.when(t == 0)
    def _():
        st1_s[...] = jnp.zeros_like(st1_s)
        st2_s[...] = jnp.zeros_like(st2_s)

    st1 = st1_s[...]                                # (N, D) — register carry within tile
    st2 = st2_s[...]

    # Hoist transcendentals & outer products off the recurrence's critical path:
    # none of these depend on the state, so the EUP/VPU can stream them while the
    # serial multiply-add chain below runs.
    dA1 = [jnp.exp(delta[j:j + 1, :] * AT) for j in range(TS)]
    dA2 = [jnp.exp(delta[TS + j:TS + j + 1, :] * AT) for j in range(TS)]
    dBu1 = [bcT[:N, j:j + 1] * du[j:j + 1, :] for j in range(TS)]
    dBu2 = [bcT[:N, TS + j:TS + j + 1] * du[TS + j:TS + j + 1, :] for j in range(TS)]

    rows = []
    for j in range(TS):
        st1 = dA1[j] * st1 + dBu1[j]                # pure FMA on (N, D)
        st2 = dA2[j] * st2 + dBu2[j]
        # y_j via VPU multiply + sublane reduction (no M=1 MXU matmul)
        y_j = (jnp.sum(bcT[N:, j:j + 1] * st1, axis=0, keepdims=True)
               + jnp.sum(bcT[N:, TS + j:TS + j + 1] * st2, axis=0, keepdims=True))
        rows.append(y_j)
    st1_s[...] = st1
    st2_s[...] = st2

    y = jnp.concatenate(rows, axis=0)               # (TS, D)

    # ---- epilogue: (y1 + y2 + D-skip) * z + residual ----
    mix = (u1 + u2) * dpar_ref[...]
    o_ref[0] = (y + mix) * z + x


def vision_mamba_block(x, params, *, seq_tile=8):
    B, S, D = x.shape
    N = params["at_neg"].shape[0]
    assert seq_tile % 8 == 0, "seq_tile must be a multiple of 8 (full sublane tiles)"
    assert S % seq_tile == 0, "S must be a multiple of seq_tile"
    # TODO(synk): pad + mask tail tokens instead of asserting for ragged S.

    plist = [params[k] for k in PARAM_ORDER]

    def full_spec(p):
        return pl.BlockSpec(p.shape, lambda b, t: (0, 0))

    in_specs = [pl.BlockSpec((1, seq_tile, D), lambda b, t: (b, t, 0))]
    in_specs += [full_spec(p) for p in plist]
    out_specs = pl.BlockSpec((1, seq_tile, D), lambda b, t: (b, t, 0))

    scratch_shapes = [
        pltpu.VMEM((N, D), jnp.float32),   # scan state, forward-conv branch
        pltpu.VMEM((N, D), jnp.float32),   # scan state, backward-conv branch
    ]

    return pl.pallas_call(
        vim_block_kernel,
        out_shape=jax.ShapeDtypeStruct((B, S, D), jnp.float32),
        grid_spec=pltpu.PrefetchScalarGridSpec(
            num_scalar_prefetch=0,
            grid=(B, S // seq_tile),
            in_specs=in_specs,
            out_specs=out_specs,
            scratch_shapes=scratch_shapes,
        ),
        compiler_params=pltpu.CompilerParams(
            dimension_semantics=("parallel", "arbitrary"),
            vmem_limit_bytes=32 * 1024 * 1024,
        ),
    )(x, *plist)


def init_params(key, dim, dt_rank, dim_inner, d_state):
    D, R, Din, N = dim, dt_rank, dim_inner, d_state
    assert Din == D, "reference selective_scan requires dim_inner == dim"
    ks = jax.random.split(key, 11)

    def w(k, shape, scale=0.1):
        return jax.random.normal(k, shape, jnp.float32) * scale

    wp = w(ks[0], (D, D)); bp = w(ks[1], (1, D))
    wcf = w(ks[2], (D, D)); bcf = w(ks[3], (1, D))     # forward conv1d (k=1), (in,out)
    wcb = w(ks[4], (D, D)); bcb = w(ks[5], (1, D))     # backward conv1d (k=1), (in,out)
    wdelta = w(ks[6], (D, R))
    wB = w(ks[7], (D, N))
    wC = w(ks[8], (D, N))
    wdt = w(ks[9], (R, Din)); bdt = w(ks[10], (1, Din))

    # Fold the low-rank delta projection (no nonlinearity between the two linears).
    wdelta_full = wdelta @ wdt                          # (D, D), exact in f32

    # A_log = log(arange(1, N+1)) repeated over dim_inner rows; store -exp(A_log)^T.
    alogT = jnp.log(jnp.tile(jnp.arange(1, N + 1, dtype=jnp.float32)[:, None], (1, Din)))
    at_neg = -jnp.exp(alogT)                            # (N, D)

    bf16 = jnp.bfloat16
    return dict(
        ln_g=jnp.ones((1, D), jnp.float32),
        ln_b=jnp.zeros((1, D), jnp.float32),
        wp=wp.astype(bf16), bp=bp,
        wcc=jnp.concatenate([wcf, wcb], axis=1).astype(bf16),          # (D, 2D)
        bcc=jnp.concatenate([bcf, bcb], axis=1),                       # (1, 2D)
        wdbc=jnp.concatenate([wdelta_full, wB, wC], axis=1).astype(bf16),  # (D, D+2N)
        bdt=bdt,
        at_neg=at_neg,
        dpar=jnp.ones((1, Din), jnp.float32),
    )


def ref_forward(x, p):
    """Pure-JAX reference mirroring the PyTorch forward (same folded params and
    bf16 MXU operands as the kernel; scan math kept in f32 VPU ops)."""
    B, S, D = x.shape
    bf16 = jnp.bfloat16

    def mm(a, w):
        return jnp.dot(a.astype(bf16), w, preferred_element_type=jnp.float32)

    mu = x.mean(-1, keepdims=True)
    var = ((x - mu) ** 2).mean(-1, keepdims=True)
    xn = (x - mu) * jax.lax.rsqrt(var + 1e-5) * p["ln_g"][0] + p["ln_b"][0]
    xp = mm(xn, p["wp"]) + p["bp"][0]
    z = xp * jax.nn.sigmoid(xp)

    uc = _softplus(mm(xp, p["wcc"]) + p["bcc"][0])      # (B, S, 2D)
    u1, u2 = uc[..., :D], uc[..., D:]

    N = p["at_neg"].shape[0]
    A_T = p["at_neg"]                                   # (N, D)
    Dp = p["dpar"][0]

    def ssm(u):
        dbc = mm(u, p["wdbc"])                          # (B, S, D+2N)
        delta = _softplus(dbc[..., :D] + p["bdt"][0])   # (B, S, D)
        Bm = dbc[..., D:D + N]
        Cm = dbc[..., D + N:D + 2 * N]
        dA = jnp.exp(delta[:, :, None, :] * A_T[None, None, :, :])      # (B,S,N,D)
        dBu = Bm[..., None] * (delta * u)[:, :, None, :]                 # (B,S,N,D)
        state = jnp.zeros((B, N, D), jnp.float32)
        ys = []
        for i in range(S):
            state = dA[:, i] * state + dBu[:, i]
            ys.append(jnp.sum(Cm[:, i][:, :, None] * state, axis=1))     # (B, D)
        return jnp.stack(ys, axis=1) + u * Dp

    y1 = ssm(u1)
    y2 = ssm(u2)
    return (y1 + y2) * z + x


if __name__ == "__main__":
    key = jax.random.PRNGKey(0)
    kx, kp = jax.random.split(key)

    # small shapes consistent with the module (dim == dim_inner required by the
    # reference selective_scan); S multiple of 8 so seq_tile=8 gives 2 tiles
    # (exercises the persistent scan state across the sequence grid axis).
    B, S, D = 2, 16, 32
    dt_rank, dim_inner, d_state = 8, D, 16

    x = jax.random.normal(kx, (B, S, D), jnp.float32)
    params = init_params(kp, D, dt_rank, dim_inner, d_state)

    out = jax.block_until_ready(vision_mamba_block(x, params, seq_tile=8))
    ref = jax.block_until_ready(ref_forward(x, params))

    assert out.shape == (B, S, D)
    max_err = float(jnp.max(jnp.abs(out - ref)))
    assert jnp.allclose(out, ref, rtol=5e-3, atol=5e-3), f"max_err={max_err}"

    print("KERNEL_OK")
</pallas_src>

<mosaic_0001>
module attributes {stable_mosaic.version = 11 : i64} {
  func.func @vim_block_kernel(%arg0: i32, %arg1: i32, %arg2: memref<1x8x32xf32, #tpu.memory_space<vmem>>, %arg3: memref<1x32xf32, #tpu.memory_space<vmem>>, %arg4: memref<1x32xf32, #tpu.memory_space<vmem>>, %arg5: memref<32x32xbf16, #tpu.memory_space<vmem>>, %arg6: memref<1x32xf32, #tpu.memory_space<vmem>>, %arg7: memref<32x64xbf16, #tpu.memory_space<vmem>>, %arg8: memref<1x64xf32, #tpu.memory_space<vmem>>, %arg9: memref<32x64xbf16, #tpu.memory_space<vmem>>, %arg10: memref<1x32xf32, #tpu.memory_space<vmem>>, %arg11: memref<16x32xf32, #tpu.memory_space<vmem>>, %arg12: memref<1x32xf32, #tpu.memory_space<vmem>>, %arg13: memref<1x8x32xf32, #tpu.memory_space<vmem>>, %arg14: memref<16x32xf32, #tpu.memory_space<vmem>>, %arg15: memref<16x32xf32, #tpu.memory_space<vmem>>) attributes {dimension_semantics = [#tpu.dimension_semantics<parallel>, #tpu.dimension_semantics<arbitrary>], iteration_bounds = array<i64: 2, 2>, scalar_prefetch = 0 : i64, scratch_operands = 2 : i64, tpu.core_type = #tpu.core_type<tc>, window_params = [{transform_indices = @transform_0, window_bounds = array<i64: 1, 8, 32>}, {pipeline_mode = #tpu.pipeline_mode<synchronous>, transform_indices = @transform_1, window_bounds = array<i64: 1, 32>}, {pipeline_mode = #tpu.pipeline_mode<synchronous>, transform_indices = @transform_2, window_bounds = array<i64: 1, 32>}, {pipeline_mode = #tpu.pipeline_mode<synchronous>, transform_indices = @transform_3, window_bounds = array<i64: 32, 32>}, {pipeline_mode = #tpu.pipeline_mode<synchronous>, transform_indices = @transform_4, window_bounds = array<i64: 1, 32>}, {pipeline_mode = #tpu.pipeline_mode<synchronous>, transform_indices = @transform_5, window_bounds = array<i64: 32, 64>}, {pipeline_mode = #tpu.pipeline_mode<synchronous>, transform_indices = @transform_6, window_bounds = array<i64: 1, 64>}, {pipeline_mode = #tpu.pipeline_mode<synchronous>, transform_indices = @transform_7, window_bounds = array<i64: 32, 64>}, {pipeline_mode = #tpu.pipeline_mode<synchronous>, transform_indices = @transform_8, window_bounds = array<i64: 1, 32>}, {pipeline_mode = #tpu.pipeline_mode<synchronous>, transform_indices = @transform_9, window_bounds = array<i64: 16, 32>}, {pipeline_mode = #tpu.pipeline_mode<synchronous>, transform_indices = @transform_10, window_bounds = array<i64: 1, 32>}, {transform_indices = @transform_11, window_bounds = array<i64: 1, 8, 32>}]} {
    %c0 = arith.constant 0 : index
    %c0_0 = arith.constant 0 : index
    %c0_1 = arith.constant 0 : index
    %0 = vector.load %arg2[%c0, %c0_0, %c0_1] : memref<1x8x32xf32, #tpu.memory_space<vmem>>, vector<1x8x32xf32>
    %1 = vector.shape_cast %0 : vector<1x8x32xf32> to vector<8x32xf32>
    %cst = arith.constant dense<0.000000e+00> : vector<8xf32>
    %2 = vector.multi_reduction <add>, %1, %cst [1] : vector<8x32xf32> to vector<8xf32>
    %3 = vector.shape_cast %2 : vector<8xf32> to vector<8x1xf32>
    %cst_2 = arith.constant 3.200000e+01 : f32
    %4 = vector.broadcast %cst_2 : f32 to vector<8x1xf32>
    %5 = arith.divf %3, %4 : vector<8x1xf32>
    %6 = vector.broadcast %5 : vector<8x1xf32> to vector<8x32xf32>
    %7 = arith.subf %1, %6 : vector<8x32xf32>
    %8 = arith.mulf %7, %7 : vector<8x32xf32>
    %cst_3 = arith.constant dense<0.000000e+00> : vector<8xf32>
    %9 = vector.multi_reduction <add>, %8, %cst_3 [1] : vector<8x32xf32> to vector<8xf32>
    %10 = vector.shape_cast %9 : vector<8xf32> to vector<8x1xf32>
    %cst_4 = arith.constant 3.200000e+01 : f32
    %11 = vector.broadcast %cst_4 : f32 to vector<8x1xf32>
    %12 = arith.divf %10, %11 : vector<8x1xf32>
    %cst_5 = arith.constant 9.99999974E-6 : f32
    %13 = vector.broadcast %cst_5 : f32 to vector<8x1xf32>
    %14 = arith.addf %12, %13 : vector<8x1xf32>
    %15 = math.rsqrt %14 : vector<8x1xf32>
    %16 = vector.broadcast %15 : vector<8x1xf32> to vector<8x32xf32>
    %17 = arith.mulf %7, %16 : vector<8x32xf32>
    %c0_6 = arith.constant 0 : index
    %c0_7 = arith.constant 0 : index
    %18 = vector.load %arg3[%c0_6, %c0_7] : memref<1x32xf32, #tpu.memory_space<vmem>>, vector<1x32xf32>
    %19 = vector.broadcast %18 : vector<1x32xf32> to vector<8x32xf32>
    %20 = arith.mulf %17, %19 : vector<8x32xf32>
    %c0_8 = arith.constant 0 : index
    %c0_9 = arith.constant 0 : index
    %21 = vector.load %arg4[%c0_8, %c0_9] : memref<1x32xf32, #tpu.memory_space<vmem>>, vector<1x32xf32>
    %22 = vector.broadcast %21 : vector<1x32xf32> to vector<8x32xf32>
    %23 = arith.addf %20, %22 : vector<8x32xf32>
    %24 = arith.truncf %23 : vector<8x32xf32> to vector<8x32xbf16>
    %c0_10 = arith.constant 0 : index
    %c0_11 = arith.constant 0 : index
    %25 = vector.load %arg5[%c0_10, %c0_11] : memref<32x32xbf16, #tpu.memory_space<vmem>>, vector<32x32xbf16>
    %cst_12 = arith.constant dense<0.000000e+00> : vector<8x32xf32>
    %26 = tpu.matmul %24, %25, %cst_12 {dimension_numbers = #tpu.dot_dimension_numbers<[1], [0], [0], [1], [0, 0, 1, 1], [], []>} : vector<8x32xbf16>, vector<32x32xbf16>, vector<8x32xf32> -> vector<8x32xf32>
    %c0_13 = arith.constant 0 : index
    %c0_14 = arith.constant 0 : index
    %27 = vector.load %arg6[%c0_13, %c0_14] : memref<1x32xf32, #tpu.memory_space<vmem>>, vector<1x32xf32>
    %28 = vector.broadcast %27 : vector<1x32xf32> to vector<8x32xf32>
    %29 = arith.addf %26, %28 : vector<8x32xf32>
    %30 = arith.negf %29 : vector<8x32xf32>
    %31 = math.exp %30 : vector<8x32xf32>
    %cst_15 = arith.constant 1.000000e+00 : f32
    %32 = vector.broadcast %cst_15 : f32 to vector<8x32xf32>
    %33 = arith.addf %32, %31 : vector<8x32xf32>
    %34 = arith.divf %32, %33 : vector<8x32xf32>
    %35 = arith.mulf %29, %34 : vector<8x32xf32>
    %36 = arith.truncf %29 : vector<8x32xf32> to vector<8x32xbf16>
    %c0_16 = arith.constant 0 : index
    %c0_17 = arith.constant 0 : index
    %37 = vector.load %arg7[%c0_16, %c0_17] : memref<32x64xbf16, #tpu.memory_space<vmem>>, vector<32x64xbf16>
    %cst_18 = arith.constant dense<0.000000e+00> : vector<8x64xf32>
    %38 = tpu.matmul %36, %37, %cst_18 {dimension_numbers = #tpu.dot_dimension_numbers<[1], [0], [0], [1], [0, 0, 1, 1], [], []>} : vector<8x32xbf16>, vector<32x64xbf16>, vector<8x64xf32> -> vector<8x64xf32>
    %c0_19 = arith.constant 0 : index
    %c0_20 = arith.constant 0 : index
    %39 = vector.load %arg8[%c0_19, %c0_20] : memref<1x64xf32, #tpu.memory_space<vmem>>, vector<1x64xf32>
    %40 = vector.broadcast %39 : vector<1x64xf32> to vector<8x64xf32>
    %41 = arith.addf %38, %40 : vector<8x64xf32>
    %cst_21 = arith.constant 0.000000e+00 : f32
    %42 = vector.broadcast %cst_21 : f32 to vector<8x64xf32>
    %43 = arith.maximumf %41, %42 : vector<8x64xf32>
    %44 = vector.broadcast %cst_21 : f32 to vector<8x64xf32>
    %45 = arith.subf %41, %44 : vector<8x64xf32>
    %46 = arith.cmpf one, %45, %45 : vector<8x64xf32>
    %47 = vector.broadcast %cst_21 : f32 to vector<8x64xf32>
    %48 = arith.addf %41, %47 : vector<8x64xf32>
    %49 = math.absf %45 : vector<8x64xf32>
    %cst_22 = arith.constant 0.000000e+00 : f32
    %50 = vector.broadcast %cst_22 : f32 to vector<8x64xf32>
    %51 = arith.subf %50, %49 : vector<8x64xf32>
    %52 = math.exp %51 : vector<8x64xf32>
    %53 = math.log1p %52 : vector<8x64xf32>
    %54 = arith.addf %43, %53 : vector<8x64xf32>
    %55 = arith.select %46, %48, %54 : vector<8x64xi1>, vector<8x64xf32>
    %56 = vector.extract_strided_slice %55 {offsets = [0, 0], sizes = [8, 32], strides = [1, 1]} : vector<8x64xf32> to vector<8x32xf32>
    %57 = vector.extract_strided_slice %55 {offsets = [0, 32], sizes = [8, 32], strides = [1, 1]} : vector<8x64xf32> to vector<8x32xf32>
    %58 = tpu.concatenate %56, %57 in 0 : vector<8x32xf32>, vector<8x32xf32> -> vector<16x32xf32>
    %59 = arith.truncf %58 : vector<16x32xf32> to vector<16x32xbf16>
    %c0_23 = arith.constant 0 : index
    %c0_24 = arith.constant 0 : index
    %60 = vector.load %arg9[%c0_23, %c0_24] : memref<32x64xbf16, #tpu.memory_space<vmem>>, vector<32x64xbf16>
    %cst_25 = arith.constant dense<0.000000e+00> : vector<16x64xf32>
    %61 = tpu.matmul %59, %60, %cst_25 {dimension_numbers = #tpu.dot_dimension_numbers<[1], [0], [0], [1], [0, 0, 1, 1], [], []>} : vector<16x32xbf16>, vector<32x64xbf16>, vector<16x64xf32> -> vector<16x64xf32>
    %62 = vector.extract_strided_slice %61 {offsets = [0, 0], sizes = [16, 32], strides = [1, 1]} : vector<16x64xf32> to vector<16x32xf32>
    %c0_26 = arith.constant 0 : index
    %c0_27 = arith.constant 0 : index
    %63 = vector.load %arg10[%c0_26, %c0_27] : memref<1x32xf32, #tpu.memory_space<vmem>>, vector<1x32xf32>
    %64 = vector.broadcast %63 : vector<1x32xf32> to vector<16x32xf32>
    %65 = arith.addf %62, %64 : vector<16x32xf32>
    %cst_28 = arith.constant 0.000000e+00 : f32
    %66 = vector.broadcast %cst_28 : f32 to vector<16x32xf32>
    %67 = arith.maximumf %65, %66 : vector<16x32xf32>
    %68 = vector.broadcast %cst_28 : f32 to vector<16x32xf32>
    %69 = arith.subf %65, %68 : vector<16x32xf32>
    %70 = arith.cmpf one, %69, %69 : vector<16x32xf32>
    %71 = vector.broadcast %cst_28 : f32 to vector<16x32xf32>
    %72 = arith.addf %65, %71 : vector<16x32xf32>
    %73 = math.absf %69 : vector<16x32xf32>
    %cst_29 = arith.constant 0.000000e+00 : f32
    %74 = vector.broadcast %cst_29 : f32 to vector<16x32xf32>
    %75 = arith.subf %74, %73 : vector<16x32xf32>
    %76 = math.exp %75 : vector<16x32xf32>
    %77 = math.log1p %76 : vector<16x32xf32>
    %78 = arith.addf %67, %77 : vector<16x32xf32>
    %79 = arith.select %70, %72, %78 : vector<16x32xi1>, vector<16x32xf32>
    %80 = arith.mulf %79, %58 : vector<16x32xf32>
    %81 = vector.extract_strided_slice %61 {offsets = [0, 32], sizes = [16, 32], strides = [1, 1]} : vector<16x64xf32> to vector<16x32xf32>
    %82 = tpu.transpose %81, [1, 0] : vector<16x32xf32> -> vector<32x16xf32>
    %c0_30 = arith.constant 0 : index
    %c0_31 = arith.constant 0 : index
    %83 = vector.load %arg11[%c0_30, %c0_31] : memref<16x32xf32, #tpu.memory_space<vmem>>, vector<16x32xf32>
    %c0_i32 = arith.constant 0 : i32
    %84 = arith.cmpi eq, %arg1, %c0_i32 : i32
    %85 = arith.extui %84 : i1 to i32
    %c0_i32_32 = arith.constant 0 : i32
    %86 = arith.cmpi ne, %85, %c0_i32_32 : i32
    scf.if %86 {
      %cst_62 = arith.constant 0.000000e+00 : f32
      %366 = vector.broadcast %cst_62 : f32 to vector<16x32xf32>
      %c0_63 = arith.constant 0 : index
      %c0_64 = arith.constant 0 : index
      %367 = vector.load %arg14[%c0_63, %c0_64] : memref<16x32xf32, #tpu.memory_space<vmem>>, vector<16x32xf32>
      tpu.vector_store %arg14[%c0_63, %c0_64], %366 {strides = array<i32>} : memref<16x32xf32, #tpu.memory_space<vmem>>, vector<16x32xf32>,
      %cst_65 = arith.constant 0.000000e+00 : f32
      %368 = vector.broadcast %cst_65 : f32 to vector<16x32xf32>
      %c0_66 = arith.constant 0 : index
      %c0_67 = arith.constant 0 : index
      %369 = vector.load %arg15[%c0_66, %c0_67] : memref<16x32xf32, #tpu.memory_space<vmem>>, vector<16x32xf32>
      tpu.vector_store %arg15[%c0_66, %c0_67], %368 {strides = array<i32>} : memref<16x32xf32, #tpu.memory_space<vmem>>, vector<16x32xf32>,
    } else {
    }
    %c0_33 = arith.constant 0 : index
    %c0_34 = arith.constant 0 : index
    %87 = vector.load %arg14[%c0_33, %c0_34] : memref<16x32xf32, #tpu.memory_space<vmem>>, vector<16x32xf32>
    %c0_35 = arith.constant 0 : index
    %c0_36 = arith.constant 0 : index
    %88 = vector.load %arg15[%c0_35, %c0_36] : memref<16x32xf32, #tpu.memory_space<vmem>>, vector<16x32xf32>
    %89 = vector.extract_strided_slice %79 {offsets = [0, 0], sizes = [1, 32], strides = [1, 1]} : vector<16x32xf32> to vector<1x32xf32>
    %90 = vector.broadcast %89 : vector<1x32xf32> to vector<16x32xf32>
    %91 = arith.mulf %90, %83 : vector<16x32xf32>
    %92 = math.exp %91 : vector<16x32xf32>
    %93 = vector.extract_strided_slice %79 {offsets = [1, 0], sizes = [1, 32], strides = [1, 1]} : vector<16x32xf32> to vector<1x32xf32>
    %94 = vector.broadcast %93 : vector<1x32xf32> to vector<16x32xf32>
    %95 = arith.mulf %94, %83 : vector<16x32xf32>
    %96 = math.exp %95 : vector<16x32xf32>
    %97 = vector.extract_strided_slice %79 {offsets = [2, 0], sizes = [1, 32], strides = [1, 1]} : vector<16x32xf32> to vector<1x32xf32>
    %98 = vector.broadcast %97 : vector<1x32xf32> to vector<16x32xf32>
    %99 = arith.mulf %98, %83 : vector<16x32xf32>
    %100 = math.exp %99 : vector<16x32xf32>
    %101 = vector.extract_strided_slice %79 {offsets = [3, 0], sizes = [1, 32], strides = [1, 1]} : vector<16x32xf32> to vector<1x32xf32>
    %102 = vector.broadcast %101 : vector<1x32xf32> to vector<16x32xf32>
    %103 = arith.mulf %102, %83 : vector<16x32xf32>
    %104 = math.exp %103 : vector<16x32xf32>
    %105 = vector.extract_strided_slice %79 {offsets = [4, 0], sizes = [1, 32], strides = [1, 1]} : vector<16x32xf32> to vector<1x32xf32>
    %106 = vector.broadcast %105 : vector<1x32xf32> to vector<16x32xf32>
    %107 = arith.mulf %106, %83 : vector<16x32xf32>
    %108 = math.exp %107 : vector<16x32xf32>
    %109 = vector.extract_strided_slice %79 {offsets = [5, 0], sizes = [1, 32], strides = [1, 1]} : vector<16x32xf32> to vector<1x32xf32>
    %110 = vector.broadcast %109 : vector<1x32xf32> to vector<16x32xf32>
    %111 = arith.mulf %110, %83 : vector<16x32xf32>
    %112 = math.exp %111 : vector<16x32xf32>
    %113 = vector.extract_strided_slice %79 {offsets = [6, 0], sizes = [1, 32], strides = [1, 1]} : vector<16x32xf32> to vector<1x32xf32>
    %114 = vector.broadcast %113 : vector<1x32xf32> to vector<16x32xf32>
    %115 = arith.mulf %114, %83 : vector<16x32xf32>
    %116 = math.exp %115 : vector<16x32xf32>
    %117 = vector.extract_strided_slice %79 {offsets = [7, 0], sizes = [1, 32], strides = [1, 1]} : vector<16x32xf32> to vector<1x32xf32>
    %118 = vector.broadcast %117 : vector<1x32xf32> to vector<16x32xf32>
    %119 = arith.mulf %118, %83 : vector<16x32xf32>
    %120 = math.exp %119 : vector<16x32xf32>
    %121 = vector.extract_strided_slice %79 {offsets = [8, 0], sizes = [1, 32], strides = [1, 1]} : vector<16x32xf32> to vector<1x32xf32>
    %122 = vector.broadcast %121 : vector<1x32xf32> to vector<16x32xf32>
    %123 = arith.mulf %122, %83 : vector<16x32xf32>
    %124 = math.exp %123 : vector<16x32xf32>
    %125 = vector.extract_strided_slice %79 {offsets = [9, 0], sizes = [1, 32], strides = [1, 1]} : vector<16x32xf32> to vector<1x32xf32>
    %126 = vector.broadcast %125 : vector<1x32xf32> to vector<16x32xf32>
    %127 = arith.mulf %126, %83 : vector<16x32xf32>
    %128 = math.exp %127 : vector<16x32xf32>
    %129 = vector.extract_strided_slice %79 {offsets = [10, 0], sizes = [1, 32], strides = [1, 1]} : vector<16x32xf32> to vector<1x32xf32>
    %130 = vector.broadcast %129 : vector<1x32xf32> to vector<16x32xf32>
    %131 = arith.mulf %130, %83 : vector<16x32xf32>
    %132 = math.exp %131 : vector<16x32xf32>
    %133 = vector.extract_strided_slice %79 {offsets = [11, 0], sizes = [1, 32], strides = [1, 1]} : vector<16x32xf32> to vector<1x32xf32>
    %134 = vector.broadcast %133 : vector<1x32xf32> to vector<16x32xf32>
    %135 = arith.mulf %134, %83 : vector<16x32xf32>
    %136 = math.exp %135 : vector<16x32xf32>
    %137 = vector.extract_strided_slice %79 {offsets = [12, 0], sizes = [1, 32], strides = [1, 1]} : vector<16x32xf32> to vector<1x32xf32>
    %138 = vector.broadcast %137 : vector<1x32xf32> to vector<16x32xf32>
    %139 = arith.mulf %138, %83 : vector<16x32xf32>
    %140 = math.exp %139 : vector<16x32xf32>
    %141 = vector.extract_strided_slice %79 {offsets = [13, 0], sizes = [1, 32], strides = [1, 1]} : vector<16x32xf32> to vector<1x32xf32>
    %142 = vector.broadcast %141 : vector<1x32xf32> to vector<16x32xf32>
    %143 = arith.mulf %142, %83 : vector<16x32xf32>
    %144 = math.exp %143 : vector<16x32xf32>
    %145 = vector.extract_strided_slice %79 {offsets = [14, 0], sizes = [1, 32], strides = [1, 1]} : vector<16x32xf32> to vector<1x32xf32>
    %146 = vector.broadcast %145 : vector<1x32xf32> to vector<16x32xf32>
    %147 = arith.mulf %146, %83 : vector<16x32xf32>
    %148 = math.exp %147 : vector<16x32xf32>
    %149 = vector.extract_strided_slice %79 {offsets = [15, 0], sizes = [1, 32], strides = [1, 1]} : vector<16x32xf32> to vector<1x32xf32>
    %150 = vector.broadcast %149 : vector<1x32xf32> to vector<16x32xf32>
    %151 = arith.mulf %150, %83 : vector<16x32xf32>
    %152 = math.exp %151 : vector<16x32xf32>
    %153 = vector.extract_strided_slice %82 {offsets = [0, 0], sizes = [16, 1], strides = [1, 1]} : vector<32x16xf32> to vector<16x1xf32>
    %154 = vector.extract_strided_slice %80 {offsets = [0, 0], sizes = [1, 32], strides = [1, 1]} : vector<16x32xf32> to vector<1x32xf32>
    %155 = vector.broadcast %153 : vector<16x1xf32> to vector<16x32xf32>
    %156 = vector.broadcast %154 : vector<1x32xf32> to vector<16x32xf32>
    %157 = arith.mulf %155, %156 : vector<16x32xf32>
    %158 = vector.extract_strided_slice %82 {offsets = [0, 1], sizes = [16, 1], strides = [1, 1]} : vector<32x16xf32> to vector<16x1xf32>
    %159 = vector.extract_strided_slice %80 {offsets = [1, 0], sizes = [1, 32], strides = [1, 1]} : vector<16x32xf32> to vector<1x32xf32>
    %160 = vector.broadcast %158 : vector<16x1xf32> to vector<16x32xf32>
    %161 = vector.broadcast %159 : vector<1x32xf32> to vector<16x32xf32>
    %162 = arith.mulf %160, %161 : vector<16x32xf32>
    %163 = vector.extract_strided_slice %82 {offsets = [0, 2], sizes = [16, 1], strides = [1, 1]} : vector<32x16xf32> to vector<16x1xf32>
    %164 = vector.extract_strided_slice %80 {offsets = [2, 0], sizes = [1, 32], strides = [1, 1]} : vector<16x32xf32> to vector<1x32xf32>
    %165 = vector.broadcast %163 : vector<16x1xf32> to vector<16x32xf32>
    %166 = vector.broadcast %164 : vector<1x32xf32> to vector<16x32xf32>
    %167 = arith.mulf %165, %166 : vector<16x32xf32>
    %168 = vector.extract_strided_slice %82 {offsets = [0, 3], sizes = [16, 1], strides = [1, 1]} : vector<32x16xf32> to vector<16x1xf32>
    %169 = vector.extract_strided_slice %80 {offsets = [3, 0], sizes = [1, 32], strides = [1, 1]} : vector<16x32xf32> to vector<1x32xf32>
    %170 = vector.broadcast %168 : vector<16x1xf32> to vector<16x32xf32>
    %171 = vector.broadcast %169 : vector<1x32xf32> to vector<16x32xf32>
    %172 = arith.mulf %170, %171 : vector<16x32xf32>
    %173 = vector.extract_strided_slice %82 {offsets = [0, 4], sizes = [16, 1], strides = [1, 1]} : vector<32x16xf32> to vector<16x1xf32>
    %174 = vector.extract_strided_slice %80 {offsets = [4, 0], sizes = [1, 32], strides = [1, 1]} : vector<16x32xf32> to vector<1x32xf32>
    %175 = vector.broadcast %173 : vector<16x1xf32> to vector<16x32xf32>
    %176 = vector.broadcast %174 : vector<1x32xf32> to vector<16x32xf32>
    %177 = arith.mulf %175, %176 : vector<16x32xf32>
    %178 = vector.extract_strided_slice %82 {offsets = [0, 5], sizes = [16, 1], strides = [1, 1]} : vector<32x16xf32> to vector<16x1xf32>
    %179 = vector.extract_strided_slice %80 {offsets = [5, 0], sizes = [1, 32], strides = [1, 1]} : vector<16x32xf32> to vector<1x32xf32>
    %180 = vector.broadcast %178 : vector<16x1xf32> to vector<16x32xf32>
    %181 = vector.broadcast %179 : vector<1x32xf32> to vector<16x32xf32>
    %182 = arith.mulf %180, %181 : vector<16x32xf32>
    %183 = vector.extract_strided_slice %82 {offsets = [0, 6], sizes = [16, 1], strides = [1, 1]} : vector<32x16xf32> to vector<16x1xf32>
    %184 = vector.extract_strided_slice %80 {offsets = [6, 0], sizes = [1, 32], strides = [1, 1]} : vector<16x32xf32> to vector<1x32xf32>
    %185 = vector.broadcast %183 : vector<16x1xf32> to vector<16x32xf32>
    %186 = vector.broadcast %184 : vector<1x32xf32> to vector<16x32xf32>
    %187 = arith.mulf %185, %186 : vector<16x32xf32>
    %188 = vector.extract_strided_slice %82 {offsets = [0, 7], sizes = [16, 1], strides = [1, 1]} : vector<32x16xf32> to vector<16x1xf32>
    %189 = vector.extract_strided_slice %80 {offsets = [7, 0], sizes = [1, 32], strides = [1, 1]} : vector<16x32xf32> to vector<1x32xf32>
    %190 = vector.broadcast %188 : vector<16x1xf32> to vector<16x32xf32>
    %191 = vector.broadcast %189 : vector<1x32xf32> to vector<16x32xf32>
    %192 = arith.mulf %190, %191 : vector<16x32xf32>
    %193 = vector.extract_strided_slice %82 {offsets = [0, 8], sizes = [16, 1], strides = [1, 1]} : vector<32x16xf32> to vector<16x1xf32>
    %194 = vector.extract_strided_slice %80 {offsets = [8, 0], sizes = [1, 32], strides = [1, 1]} : vector<16x32xf32> to vector<1x32xf32>
    %195 = vector.broadcast %193 : vector<16x1xf32> to vector<16x32xf32>
    %196 = vector.broadcast %194 : vector<1x32xf32> to vector<16x32xf32>
    %197 = arith.mulf %195, %196 : vector<16x32xf32>
    %198 = vector.extract_strided_slice %82 {offsets = [0, 9], sizes = [16, 1], strides = [1, 1]} : vector<32x16xf32> to vector<16x1xf32>
    %199 = vector.extract_strided_slice %80 {offsets = [9, 0], sizes = [1, 32], strides = [1, 1]} : vector<16x32xf32> to vector<1x32xf32>
    %200 = vector.broadcast %198 : vector<16x1xf32> to vector<16x32xf32>
    %201 = vector.broadcast %199 : vector<1x32xf32> to vector<16x32xf32>
    %202 = arith.mulf %200, %201 : vector<16x32xf32>
    %203 = vector.extract_strided_slice %82 {offsets = [0, 10], sizes = [16, 1], strides = [1, 1]} : vector<32x16xf32> to vector<16x1xf32>
    %204 = vector.extract_strided_slice %80 {offsets = [10, 0], sizes = [1, 32], strides = [1, 1]} : vector<16x32xf32> to vector<1x32xf32>
    %205 = vector.broadcast %203 : vector<16x1xf32> to vector<16x32xf32>
    %206 = vector.broadcast %204 : vector<1x32xf32> to vector<16x32xf32>
    %207 = arith.mulf %205, %206 : vector<16x32xf32>
    %208 = vector.extract_strided_slice %82 {offsets = [0, 11], sizes = [16, 1], strides = [1, 1]} : vector<32x16xf32> to vector<16x1xf32>
    %209 = vector.extract_strided_slice %80 {offsets = [11, 0], sizes = [1, 32], strides = [1, 1]} : vector<16x32xf32> to vector<1x32xf32>
    %210 = vector.broadcast %208 : vector<16x1xf32> to vector<16x32xf32>
    %211 = vector.broadcast %209 : vector<1x32xf32> to vector<16x32xf32>
    %212 = arith.mulf %210, %211 : vector<16x32xf32>
    %213 = vector.extract_strided_slice %82 {offsets = [0, 12], sizes = [16, 1], strides = [1, 1]} : vector<32x16xf32> to vector<16x1xf32>
    %214 = vector.extract_strided_slice %80 {offsets = [12, 0], sizes = [1, 32], strides = [1, 1]} : vector<16x32xf32> to vector<1x32xf32>
    %215 = vector.broadcast %213 : vector<16x1xf32> to vector<16x32xf32>
    %216 = vector.broadcast %214 : vector<1x32xf32> to vector<16x32xf32>
    %217 = arith.mulf %215, %216 : vector<16x32xf32>
    %218 = vector.extract_strided_slice %82 {offsets = [0, 13], sizes = [16, 1], strides = [1, 1]} : vector<32x16xf32> to vector<16x1xf32>
    %219 = vector.extract_strided_slice %80 {offsets = [13, 0], sizes = [1, 32], strides = [1, 1]} : vector<16x32xf32> to vector<1x32xf32>
    %220 = vector.broadcast %218 : vector<16x1xf32> to vector<16x32xf32>
    %221 = vector.broadcast %219 : vector<1x32xf32> to vector<16x32xf32>
    %222 = arith.mulf %220, %221 : vector<16x32xf32>
    %223 = vector.extract_strided_slice %82 {offsets = [0, 14], sizes = [16, 1], strides = [1, 1]} : vector<32x16xf32> to vector<16x1xf32>
    %224 = vector.extract_strided_slice %80 {offsets = [14, 0], sizes = [1, 32], strides = [1, 1]} : vector<16x32xf32> to vector<1x32xf32>
    %225 = vector.broadcast %223 : vector<16x1xf32> to vector<16x32xf32>
    %226 = vector.broadcast %224 : vector<1x32xf32> to vector<16x32xf32>
    %227 = arith.mulf %225, %226 : vector<16x32xf32>
    %228 = vector.extract_strided_slice %82 {offsets = [0, 15], sizes = [16, 1], strides = [1, 1]} : vector<32x16xf32> to vector<16x1xf32>
    %229 = vector.extract_strided_slice %80 {offsets = [15, 0], sizes = [1, 32], strides = [1, 1]} : vector<16x32xf32> to vector<1x32xf32>
    %230 = vector.broadcast %228 : vector<16x1xf32> to vector<16x32xf32>
    %231 = vector.broadcast %229 : vector<1x32xf32> to vector<16x32xf32>
    %232 = arith.mulf %230, %231 : vector<16x32xf32>
    %233 = arith.mulf %92, %87 : vector<16x32xf32>
    %234 = arith.addf %233, %157 : vector<16x32xf32>
    %235 = arith.mulf %124, %88 : vector<16x32xf32>
    %236 = arith.addf %235, %197 : vector<16x32xf32>
    %237 = vector.extract_strided_slice %82 {offsets = [16, 0], sizes = [16, 1], strides = [1, 1]} : vector<32x16xf32> to vector<16x1xf32>
    %238 = vector.broadcast %237 : vector<16x1xf32> to vector<16x32xf32>
    %239 = arith.mulf %238, %234 : vector<16x32xf32>
    %cst_37 = arith.constant dense<0.000000e+00> : vector<32xf32>
    %240 = vector.multi_reduction <add>, %239, %cst_37 [0] : vector<16x32xf32> to vector<32xf32>
    %241 = vector.shape_cast %240 : vector<32xf32> to vector<1x32xf32>
    %242 = vector.extract_strided_slice %82 {offsets = [16, 8], sizes = [16, 1], strides = [1, 1]} : vector<32x16xf32> to vector<16x1xf32>
    %243 = vector.broadcast %242 : vector<16x1xf32> to vector<16x32xf32>
    %244 = arith.mulf %243, %236 : vector<16x32xf32>
    %cst_38 = arith.constant dense<0.000000e+00> : vector<32xf32>
    %245 = vector.multi_reduction <add>, %244, %cst_38 [0] : vector<16x32xf32> to vector<32xf32>
    %246 = vector.shape_cast %245 : vector<32xf32> to vector<1x32xf32>
    %247 = arith.addf %241, %246 : vector<1x32xf32>
    %248 = arith.mulf %96, %234 : vector<16x32xf32>
    %249 = arith.addf %248, %162 : vector<16x32xf32>
    %250 = arith.mulf %128, %236 : vector<16x32xf32>
    %251 = arith.addf %250, %202 : vector<16x32xf32>
    %252 = vector.extract_strided_slice %82 {offsets = [16, 1], sizes = [16, 1], strides = [1, 1]} : vector<32x16xf32> to vector<16x1xf32>
    %253 = vector.broadcast %252 : vector<16x1xf32> to vector<16x32xf32>
    %254 = arith.mulf %253, %249 : vector<16x32xf32>
    %cst_39 = arith.constant dense<0.000000e+00> : vector<32xf32>
    %255 = vector.multi_reduction <add>, %254, %cst_39 [0] : vector<16x32xf32> to vector<32xf32>
    %256 = vector.shape_cast %255 : vector<32xf32> to vector<1x32xf32>
    %257 = vector.extract_strided_slice %82 {offsets = [16, 9], sizes = [16, 1], strides = [1, 1]} : vector<32x16xf32> to vector<16x1xf32>
    %258 = vector.broadcast %257 : vector<16x1xf32> to vector<16x32xf32>
    %259 = arith.mulf %258, %251 : vector<16x32xf32>
    %cst_40 = arith.constant dense<0.000000e+00> : vector<32xf32>
    %260 = vector.multi_reduction <add>, %259, %cst_40 [0] : vector<16x32xf32> to vector<32xf32>
    %261 = vector.shape_cast %260 : vector<32xf32> to vector<1x32xf32>
    %262 = arith.addf %256, %261 : vector<1x32xf32>
    %263 = arith.mulf %100, %249 : vector<16x32xf32>
    %264 = arith.addf %263, %167 : vector<16x32xf32>
    %265 = arith.mulf %132, %251 : vector<16x32xf32>
    %266 = arith.addf %265, %207 : vector<16x32xf32>
    %267 = vector.extract_strided_slice %82 {offsets = [16, 2], sizes = [16, 1], strides = [1, 1]} : vector<32x16xf32> to vector<16x1xf32>
    %268 = vector.broadcast %267 : vector<16x1xf32> to vector<16x32xf32>
    %269 = arith.mulf %268, %264 : vector<16x32xf32>
    %cst_41 = arith.constant dense<0.000000e+00> : vector<32xf32>
    %270 = vector.multi_reduction <add>, %269, %cst_41 [0] : vector<16x32xf32> to vector<32xf32>
    %271 = vector.shape_cast %270 : vector<32xf32> to vector<1x32xf32>
    %272 = vector.extract_strided_slice %82 {offsets = [16, 10], sizes = [16, 1], strides = [1, 1]} : vector<32x16xf32> to vector<16x1xf32>
    %273 = vector.broadcast %272 : vector<16x1xf32> to vector<16x32xf32>
    %274 = arith.mulf %273, %266 : vector<16x32xf32>
    %cst_42 = arith.constant dense<0.000000e+00> : vector<32xf32>
    %275 = vector.multi_reduction <add>, %274, %cst_42 [0] : vector<16x32xf32> to vector<32xf32>
    %276 = vector.shape_cast %275 : vector<32xf32> to vector<1x32xf32>
    %277 = arith.addf %271, %276 : vector<1x32xf32>
    %278 = arith.mulf %104, %264 : vector<16x32xf32>
    %279 = arith.addf %278, %172 : vector<16x32xf32>
    %280 = arith.mulf %136, %266 : vector<16x32xf32>
    %281 = arith.addf %280, %212 : vector<16x32xf32>
    %282 = vector.extract_strided_slice %82 {offsets = [16, 3], sizes = [16, 1], strides = [1, 1]} : vector<32x16xf32> to vector<16x1xf32>
    %283 = vector.broadcast %282 : vector<16x1xf32> to vector<16x32xf32>
    %284 = arith.mulf %283, %279 : vector<16x32xf32>
    %cst_43 = arith.constant dense<0.000000e+00> : vector<32xf32>
    %285 = vector.multi_reduction <add>, %284, %cst_43 [0] : vector<16x32xf32> to vector<32xf32>
    %286 = vector.shape_cast %285 : vector<32xf32> to vector<1x32xf32>
    %287 = vector.extract_strided_slice %82 {offsets = [16, 11], sizes = [16, 1], strides = [1, 1]} : vector<32x16xf32> to vector<16x1xf32>
    %288 = vector.broadcast %287 : vector<16x1xf32> to vector<16x32xf32>
    %289 = arith.mulf %288, %281 : vector<16x32xf32>
    %cst_44 = arith.constant dense<0.000000e+00> : vector<32xf32>
    %290 = vector.multi_reduction <add>, %289, %cst_44 [0] : vector<16x32xf32> to vector<32xf32>
    %291 = vector.shape_cast %290 : vector<32xf32> to vector<1x32xf32>
    %292 = arith.addf %286, %291 : vector<1x32xf32>
    %293 = arith.mulf %108, %279 : vector<16x32xf32>
    %294 = arith.addf %293, %177 : vector<16x32xf32>
    %295 = arith.mulf %140, %281 : vector<16x32xf32>
    %296 = arith.addf %295, %217 : vector<16x32xf32>
    %297 = vector.extract_strided_slice %82 {offsets = [16, 4], sizes = [16, 1], strides = [1, 1]} : vector<32x16xf32> to vector<16x1xf32>
    %298 = vector.broadcast %297 : vector<16x1xf32> to vector<16x32xf32>
    %299 = arith.mulf %298, %294 : vector<16x32xf32>
    %cst_45 = arith.constant dense<0.000000e+00> : vector<32xf32>
    %300 = vector.multi_reduction <add>, %299, %cst_45 [0] : vector<16x32xf32> to vector<32xf32>
    %301 = vector.shape_cast %300 : vector<32xf32> to vector<1x32xf32>
    %302 = vector.extract_strided_slice %82 {offsets = [16, 12], sizes = [16, 1], strides = [1, 1]} : vector<32x16xf32> to vector<16x1xf32>
    %303 = vector.broadcast %302 : vector<16x1xf32> to vector<16x32xf32>
    %304 = arith.mulf %303, %296 : vector<16x32xf32>
    %cst_46 = arith.constant dense<0.000000e+00> : vector<32xf32>
    %305 = vector.multi_reduction <add>, %304, %cst_46 [0] : vector<16x32xf32> to vector<32xf32>
    %306 = vector.shape_cast %305 : vector<32xf32> to vector<1x32xf32>
    %307 = arith.addf %301, %306 : vector<1x32xf32>
    %308 = arith.mulf %112, %294 : vector<16x32xf32>
    %309 = arith.addf %308, %182 : vector<16x32xf32>
    %310 = arith.mulf %144, %296 : vector<16x32xf32>
    %311 = arith.addf %310, %222 : vector<16x32xf32>
    %312 = vector.extract_strided_slice %82 {offsets = [16, 5], sizes = [16, 1], strides = [1, 1]} : vector<32x16xf32> to vector<16x1xf32>
    %313 = vector.broadcast %312 : vector<16x1xf32> to vector<16x32xf32>
    %314 = arith.mulf %313, %309 : vector<16x32xf32>
    %cst_47 = arith.constant dense<0.000000e+00> : vector<32xf32>
    %315 = vector.multi_reduction <add>, %314, %cst_47 [0] : vector<16x32xf32> to vector<32xf32>
    %316 = vector.shape_cast %315 : vector<32xf32> to vector<1x32xf32>
    %317 = vector.extract_strided_slice %82 {offsets = [16, 13], sizes = [16, 1], strides = [1, 1]} : vector<32x16xf32> to vector<16x1xf32>
    %318 = vector.broadcast %317 : vector<16x1xf32> to vector<16x32xf32>
    %319 = arith.mulf %318, %311 : vector<16x32xf32>
    %cst_48 = arith.constant dense<0.000000e+00> : vector<32xf32>
    %320 = vector.multi_reduction <add>, %319, %cst_48 [0] : vector<16x32xf32> to vector<32xf32>
    %321 = vector.shape_cast %320 : vector<32xf32> to vector<1x32xf32>
    %322 = arith.addf %316, %321 : vector<1x32xf32>
    %323 = arith.mulf %116, %309 : vector<16x32xf32>
    %324 = arith.addf %323, %187 : vector<16x32xf32>
    %325 = arith.mulf %148, %311 : vector<16x32xf32>
    %326 = arith.addf %325, %227 : vector<16x32xf32>
    %327 = vector.extract_strided_slice %82 {offsets = [16, 6], sizes = [16, 1], strides = [1, 1]} : vector<32x16xf32> to vector<16x1xf32>
    %328 = vector.broadcast %327 : vector<16x1xf32> to vector<16x32xf32>
    %329 = arith.mulf %328, %324 : vector<16x32xf32>
    %cst_49 = arith.constant dense<0.000000e+00> : vector<32xf32>
    %330 = vector.multi_reduction <add>, %329, %cst_49 [0] : vector<16x32xf32> to vector<32xf32>
    %331 = vector.shape_cast %330 : vector<32xf32> to vector<1x32xf32>
    %332 = vector.extract_strided_slice %82 {offsets = [16, 14], sizes = [16, 1], strides = [1, 1]} : vector<32x16xf32> to vector<16x1xf32>
    %333 = vector.broadcast %332 : vector<16x1xf32> to vector<16x32xf32>
    %334 = arith.mulf %333, %326 : vector<16x32xf32>
    %cst_50 = arith.constant dense<0.000000e+00> : vector<32xf32>
    %335 = vector.multi_reduction <add>, %334, %cst_50 [0] : vector<16x32xf32> to vector<32xf32>
    %336 = vector.shape_cast %335 : vector<32xf32> to vector<1x32xf32>
    %337 = arith.addf %331, %336 : vector<1x32xf32>
    %338 = arith.mulf %120, %324 : vector<16x32xf32>
    %339 = arith.addf %338, %192 : vector<16x32xf32>
    %340 = arith.mulf %152, %326 : vector<16x32xf32>
    %341 = arith.addf %340, %232 : vector<16x32xf32>
    %342 = vector.extract_strided_slice %82 {offsets = [16, 7], sizes = [16, 1], strides = [1, 1]} : vector<32x16xf32> to vector<16x1xf32>
    %343 = vector.broadcast %342 : vector<16x1xf32> to vector<16x32xf32>
    %344 = arith.mulf %343, %339 : vector<16x32xf32>
    %cst_51 = arith.constant dense<0.000000e+00> : vector<32xf32>
    %345 = vector.multi_reduction <add>, %344, %cst_51 [0] : vector<16x32xf32> to vector<32xf32>
    %346 = vector.shape_cast %345 : vector<32xf32> to vector<1x32xf32>
    %347 = vector.extract_strided_slice %82 {offsets = [16, 15], sizes = [16, 1], strides = [1, 1]} : vector<32x16xf32> to vector<16x1xf32>
    %348 = vector.broadcast %347 : vector<16x1xf32> to vector<16x32xf32>
    %349 = arith.mulf %348, %341 : vector<16x32xf32>
    %cst_52 = arith.constant dense<0.000000e+00> : vector<32xf32>
    %350 = vector.multi_reduction <add>, %349, %cst_52 [0] : vector<16x32xf32> to vector<32xf32>
    %351 = vector.shape_cast %350 : vector<32xf32> to vector<1x32xf32>
    %352 = arith.addf %346, %351 : vector<1x32xf32>
    %c0_53 = arith.constant 0 : index
    %c0_54 = arith.constant 0 : index
    %353 = vector.load %arg14[%c0_53, %c0_54] : memref<16x32xf32, #tpu.memory_space<vmem>>, vector<16x32xf32>
    tpu.vector_store %arg14[%c0_53, %c0_54], %339 {strides = array<i32>} : memref<16x32xf32, #tpu.memory_space<vmem>>, vector<16x32xf32>,
    %c0_55 = arith.constant 0 : index
    %c0_56 = arith.constant 0 : index
    %354 = vector.load %arg15[%c0_55, %c0_56] : memref<16x32xf32, #tpu.memory_space<vmem>>, vector<16x32xf32>
    tpu.vector_store %arg15[%c0_55, %c0_56], %341 {strides = array<i32>} : memref<16x32xf32, #tpu.memory_space<vmem>>, vector<16x32xf32>,
    %355 = tpu.concatenate %247, %262, %277, %292, %307, %322, %337, %352 in 0 : vector<1x32xf32>, vector<1x32xf32>, vector<1x32xf32>, vector<1x32xf32>, vector<1x32xf32>, vector<1x32xf32>, vector<1x32xf32>, vector<1x32xf32> -> vector<8x32xf32>
    %356 = arith.addf %56, %57 : vector<8x32xf32>
    %c0_57 = arith.constant 0 : index
    %c0_58 = arith.constant 0 : index
    %357 = vector.load %arg12[%c0_57, %c0_58] : memref<1x32xf32, #tpu.memory_space<vmem>>, vector<1x32xf32>
    %358 = vector.broadcast %357 : vector<1x32xf32> to vector<8x32xf32>
    %359 = arith.mulf %356, %358 : vector<8x32xf32>
    %360 = arith.addf %355, %359 : vector<8x32xf32>
    %361 = arith.mulf %360, %35 : vector<8x32xf32>
    %362 = arith.addf %361, %1 : vector<8x32xf32>
    %c0_59 = arith.constant 0 : index
    %c0_60 = arith.constant 0 : index
    %c0_61 = arith.constant 0 : index
    %363 = vector.load %arg13[%c0_59, %c0_60, %c0_61] : memref<1x8x32xf32, #tpu.memory_space<vmem>>, vector<1x8x32xf32>
    %364 = vector.shape_cast %363 : vector<1x8x32xf32> to vector<8x32xf32>
    %365 = vector.shape_cast %362 : vector<8x32xf32> to vector<1x8x32xf32>
    tpu.vector_store %arg13[%c0_59, %c0_60, %c0_61], %365 {strides = array<i32>} : memref<1x8x32xf32, #tpu.memory_space<vmem>>, vector<1x8x32xf32>,
    return
  }
  func.func @transform_0(%arg0: i32, %arg1: i32) -> (i32, i32, i32) {
    %c0_i32 = arith.constant 0 : i32
    %c0_i32_0 = arith.constant 0 : i32
    return %arg0, %arg1, %c0_i32 : i32, i32, i32
  }
  func.func @transform_1(%arg0: i32, %arg1: i32) -> (i32, i32) {
    %c0_i32 = arith.constant 0 : i32
    %c0_i32_0 = arith.constant 0 : i32
    %c0_i32_1 = arith.constant 0 : i32
    return %c0_i32, %c0_i32_0 : i32, i32
  }
  func.func @transform_2(%arg0: i32, %arg1: i32) -> (i32, i32) {
    %c0_i32 = arith.constant 0 : i32
    %c0_i32_0 = arith.constant 0 : i32
    %c0_i32_1 = arith.constant 0 : i32
    return %c0_i32, %c0_i32_0 : i32, i32
  }
  func.func @transform_3(%arg0: i32, %arg1: i32) -> (i32, i32) {
    %c0_i32 = arith.constant 0 : i32
    %c0_i32_0 = arith.constant 0 : i32
    %c0_i32_1 = arith.constant 0 : i32
    return %c0_i32, %c0_i32_0 : i32, i32
  }
  func.func @transform_4(%arg0: i32, %arg1: i32) -> (i32, i32) {
    %c0_i32 = arith.constant 0 : i32
    %c0_i32_0 = arith.constant 0 : i32
    %c0_i32_1 = arith.constant 0 : i32
    return %c0_i32, %c0_i32_0 : i32, i32
  }
  func.func @transform_5(%arg0: i32, %arg1: i32) -> (i32, i32) {
    %c0_i32 = arith.constant 0 : i32
    %c0_i32_0 = arith.constant 0 : i32
    %c0_i32_1 = arith.constant 0 : i32
    return %c0_i32, %c0_i32_0 : i32, i32
  }
  func.func @transform_6(%arg0: i32, %arg1: i32) -> (i32, i32) {
    %c0_i32 = arith.constant 0 : i32
    %c0_i32_0 = arith.constant 0 : i32
    %c0_i32_1 = arith.constant 0 : i32
    return %c0_i32, %c0_i32_0 : i32, i32
  }
  func.func @transform_7(%arg0: i32, %arg1: i32) -> (i32, i32) {
    %c0_i32 = arith.constant 0 : i32
    %c0_i32_0 = arith.constant 0 : i32
    %c0_i32_1 = arith.constant 0 : i32
    return %c0_i32, %c0_i32_0 : i32, i32
  }
  func.func @transform_8(%arg0: i32, %arg1: i32) -> (i32, i32) {
    %c0_i32 = arith.constant 0 : i32
    %c0_i32_0 = arith.constant 0 : i32
    %c0_i32_1 = arith.constant 0 : i32
    return %c0_i32, %c0_i32_0 : i32, i32
  }
  func.func @transform_9(%arg0: i32, %arg1: i32) -> (i32, i32) {
    %c0_i32 = arith.constant 0 : i32
    %c0_i32_0 = arith.constant 0 : i32
    %c0_i32_1 = arith.constant 0 : i32
    return %c0_i32, %c0_i32_0 : i32, i32
  }
  func.func @transform_10(%arg0: i32, %arg1: i32) -> (i32, i32) {
    %c0_i32 = arith.constant 0 : i32
    %c0_i32_0 = arith.constant 0 : i32
    %c0_i32_1 = arith.constant 0 : i32
    return %c0_i32, %c0_i32_0 : i32, i32
  }
  func.func @transform_11(%arg0: i32, %arg1: i32) -> (i32, i32, i32) {
    %c0_i32 = arith.constant 0 : i32
    %c0_i32_0 = arith.constant 0 : i32
    return %arg0, %arg1, %c0_i32 : i32, i32, i32
  }
}

</mosaic_0001>

<bundles_post_ra>
// kernel: tpu_custom_call.1
= control target key start
LH: loop header
LB: loop body
LE: loop exit
PB: predicated region body
PF: predicated region fallthrough
CT: control target
= control target key end

     0   :  { %s3441_s0 = inlined_call_operand.hbm [shape: f32[2,16,32], index: 0, kind: input, shape index: {}]   ;;  %s3442_s1 = inlined_call_operand.vmem [shape: f32[1,32], index: 1, kind: input, shape index: {}]   ;;  %s3443_s2 = inlined_call_operand.vmem [shape: f32[1,32], index: 2, kind: input, shape index: {}]   ;;  %s3444_s3 = inlined_call_operand.hbm [shape: bf16[32,32], index: 3, kind: input, shape index: {}]   ;;  %s3445_s4 = inlined_call_operand.hbm [shape: f32[1,32], index: 4, kind: input, shape index: {}]   ;;  %s3446_s5 = inlined_call_operand.vmem [shape: bf16[32,64], index: 5, kind: input, shape index: {}]   ;;  %s3447_s6 = inlined_call_operand.hbm [shape: f32[1,64], index: 6, kind: input, shape index: {}]   ;;  %s3448_s7 = inlined_call_operand.hbm [shape: bf16[32,64], index: 7, kind: input, shape index: {}]   ;;  %s3449_s8 = inlined_call_operand.hbm [shape: f32[1,32], index: 8, kind: input, shape index: {}]   ;;  %s3450_s9 = inlined_call_operand.vmem [shape: f32[16,32], index: 9, kind: input, shape index: {}]   ;;  %s3451_s10 = inlined_call_operand.vmem [shape: f32[1,32], index: 10, kind: input, shape index: {}]   ;;  %s3452_s11 = inlined_call_operand.hbm [shape: f32[2,16,32], index: 11, kind: output, shape index: {}]  }
   0x1   :  { %3468 = sst [smem:[#allocation26_spill]] %s3442_s1 }
   0x2   :  { %3469 = sst [smem:[#allocation27_spill]] %s3443_s2 }
   0x3   :  { %3470 = sst [smem:[#allocation28_spill]] %s3444_s3 }
   0x4   :  { %3471 = sst [smem:[#allocation29_spill]] %s3445_s4 }
   0x5   :  { %3472 = sst [smem:[#allocation30_spill]] %s3446_s5 }
   0x6   :  { %3473 = sst [smem:[#allocation31_spill]] %s3447_s6 }
   0x7   :  { %3474 = sst [smem:[#allocation32_spill]] %s3448_s7 }
   0x8   :  { %3475 = sst [smem:[#allocation33_spill]] %s3449_s8 }
   0x9   :  { %3476 = sst [smem:[#allocation34_spill]] %s3451_s10 }
   0xa   :  { %3477 = sst [smem:[#allocation35_spill]] %s3452_s11 }
   0xb   :  { %16 = vsyncpa [#allocation5], 0 }
   0xc   :  { %18 = vsyncpa [#allocation5 + $0x1], 0 }
   0xd   :  { %19 = vsyncpa [#allocation8], 0 }
   0xe   :  { %20 = vsyncpa [#allocation11], 0 }
   0xf   :  { %21 = vsyncpa [#allocation14], 0 }
  0x10   :  { %22 = vsyncpa [#allocation6], 0 }
  0x11   :  { %24 = vsyncpa [#allocation6 + $0x1], 0  ;;  %s2522_s17 = smov 0   ;;  %s2524_s18 = smov 0  }
  0x12   :  { %s2526_s19 = smov 0   ;;  %s2528_s20 = smov 0  }
  0x13   :  { %s2530_s21 = smov 0   ;;  %s2532_s22 = smov 0  }
  0x14   :  { %s2534_s23 = smov 0   ;;  %s2536_s24 = smov 0  }
  0x15 LB: > { %3478 = sst [smem:[#allocation21_spill]] %s2415_s20  ;;  %s3453_s25 = sadd.s32 4294967295, %s2431_s24   ;;  %s2431_s24 = sphi %s2536_s24, %s30_s24   ;;  %s2427_s23 = sphi %s2534_s23, %s3527_s23   ;;  %s2423_s22 = sphi %s2532_s22, %s3526_s22   ;;  %s2419_s21 = sphi %s2530_s21, %s3525_s21   ;;  %s2415_s20 = sphi %s2528_s20, %s3524_s20   ;;  %s2411_s19 = sphi %s2526_s19, %s3523_s19   ;;  %s2407_s18 = sphi %s2524_s18, %s3522_s18   ;;  %s2403_s17 = sphi %s2522_s17, %s3521_s17  }
  0x16   : > { %3479 = sst [smem:[#allocation22_spill]] %s2419_s21  ;;  %p1791_p0 = scmp.ge.s32.totalorder %s2431_s24, 1 }
  0x17   : > { %p2566_p1 = scmp.eq.s32.totalorder %s3453_s25, 0  ;;  %p313_p2 = scmp.lt.s32.totalorder %s2431_s24, 5 }
  0x18   : > { %s2433_s28 = smov [#allocation7]   ;;  %s2434_s12 = smov [#allocation10]  }
  0x19   : > { %s3480_s26 = scalar_select %p2566_p1, 1, 0 }
  0x1a   : > { %p2571_p3 = pnand %p1791_p0, %p313_p2  ;;  %s331_s29 = sshll.u32 %s2433_s28, 4  ;;  %s2575_s29 = int_to_ptr.vmem [resolvable:$true] %s331_s29 }
  0x1b   : > { %s359_s13 = sshll.u32 %s2434_s12, 4  ;;  %s2435_s14 = smov [#allocation9]   ;;  %s2585_s13 = int_to_ptr.vmem [resolvable:$true] %s359_s13 }
  0x1c   : > { %s3481_s27 = scalar_select %p2571_p3, 1, 0 }
  0x1d   : > { %p1888_p4 = pneg %p2571_p3  ;;  %s2587_s15 = sshll.u32 %s2435_s14, 4  ;;  %s346_s15 = int_to_ptr.vmem [resolvable:$true] %s2587_s15 }
  0x1e   : > { %s3483_s3 = sld [smem:[#allocation28_spill]] }
  0x1f   : > { %p2581_p5 = pnand %p1888_p4, %p2566_p1 }
  0x21   : > { %p2597_p7 = pneg %p2581_p5 }
  0x24   : > { %s2151_s28 = scalar_lea.hbm %s3483_s3, 256 }
  0x25   : > { %p2152_p6 = scmp.ne.s32.totalorder %s3483_s3, %s2151_s28  ;;  %p2158_p10 = scmp.lt.u32.totalorder %s2151_s28, %s3483_s3 }
  0x27   : > { %p2154_p8 = pnand %p2597_p7, %p2152_p6 }
  0x29   : > { %p2155_p9 = pneg %p2154_p8 }
  0x2b   : > { %p2160_p11 = pnand %p2158_p10, %p2155_p9 }
  0x2d   : > { %2163 = shalt.err (!%p2160_p11)
}
  0x2e   : > { %s2164_s10 = scalar_lea.vmem %s2575_s29, 256  ;;  %p2172_p2 = scmp.lt.s32.totalorder %s2575_s29, %s2575_s29 }
  0x2f   : > { %p2165_p12 = scmp.ne.s32.totalorder %s2575_s29, %s2164_s10  ;;  %p2173_p4 = scmp.lt.s32.totalorder %s2164_s10, %s2164_s10 }
  0x31   : > { %p2167_p13 = pnand %p2165_p12, %p2597_p7  ;;  %p2174_p6 = por %p2173_p4, %p2172_p2 }
  0x33   : > { %p2168_p0 = pneg %p2167_p13 }
  0x35   : > { %p2175_p8 = pnand %p2174_p6, %p2168_p0 }
  0x37   : > { %2178 = shalt.err (!%p2175_p8)
}
  0x38   : > { %s3459_s11 = smov 64   ;;  %s2437_s25 = smov 4  }
  0x39   : > { %1891 = dma.hbm_to_vmem [thread:$0]  (!%p2581_p5), %s3483_s3, 256, %s2575_s29, [#allocation8], %s3459_s11, %s3459_s11, %s2437_s25  }
  0x3a   : > { %s3485_s6 = sld [smem:[#allocation31_spill]] }
  0x40   : > { %s2179_s10 = scalar_lea.hbm %s3485_s6, 16 }
  0x41   : > { %p2180_p9 = scmp.ne.s32.totalorder %s3485_s6, %s2179_s10  ;;  %p2186_p12 = scmp.lt.u32.totalorder %s2179_s10, %s3485_s6 }
  0x43   : > { %p2182_p10 = pnand %p2180_p9, %p2597_p7 }
  0x45   : > { %p2183_p11 = pneg %p2182_p10 }
  0x47   : > { %p2188_p13 = pnand %p2186_p12, %p2183_p11 }
  0x49   : > { %2191 = shalt.err (!%p2188_p13)
}
  0x4a   : > { %s2192_s29 = scalar_lea.vmem %s2585_s13, 16  ;;  %s2199_s2 = scalar_lea.vmem %s2585_s13, 32 }
  0x4b   : > { %p2193_p0 = scmp.ne.s32.totalorder %s2585_s13, %s2192_s29  ;;  %p2200_p6 = scmp.lt.s32.totalorder %s2585_s13, %s2585_s13 }
  0x4c   : > { %p2201_p8 = scmp.lt.s32.totalorder %s2199_s2, %s2192_s29 }
  0x4d   : > { %p2195_p2 = pnand %p2193_p0, %p2597_p7 }
  0x4e   : > { %p2202_p9 = por %p2201_p8, %p2200_p6 }
  0x4f   : > { %p2196_p4 = pneg %p2195_p2 }
  0x51   : > { %p2203_p10 = pnand %p2202_p9, %p2196_p4 }
  0x53   : > { %2206 = shalt.err (!%p2203_p10)
}
  0x54   : > { %1897 = dma.hbm_to_vmem [thread:$0]  (!%p2581_p5), %s3485_s6, 16, %s2585_s13, [#allocation11]  }
  0x55   : > { %s3486_s4 = sld [smem:[#allocation29_spill]] }
  0x5b   : > { %s2207_s28 = scalar_lea.hbm %s3486_s4, 16 }
  0x5c   : > { %p2208_p11 = scmp.ne.s32.totalorder %s3486_s4, %s2207_s28  ;;  %p2214_p0 = scmp.lt.u32.totalorder %s2207_s28, %s3486_s4 }
  0x5e   : > { %p2210_p12 = pnand %p2208_p11, %p2597_p7 }
  0x60   : > { %p2211_p13 = pneg %p2210_p12 }
  0x62   : > { %p2216_p2 = pnand %p2214_p0, %p2211_p13 }
  0x64   : > { %2219 = shalt.err (!%p2216_p2)
}
  0x65   : > { %s2220_s2 = scalar_lea.vmem %s346_s15, 16  ;;  %s2227_s13 = scalar_lea.vmem %s346_s15, 32 }
  0x66   : > { %p2221_p4 = scmp.ne.s32.totalorder %s346_s15, %s2220_s2  ;;  %p2228_p9 = scmp.lt.s32.totalorder %s346_s15, %s346_s15 }
  0x67   : > { %p2229_p10 = scmp.lt.s32.totalorder %s2227_s13, %s2220_s2 }
  0x68   : > { %p2223_p6 = pnand %p2221_p4, %p2597_p7 }
  0x69   : > { %p2230_p3 = por %p2229_p10, %p2228_p9 }
  0x6a   : > { %p2224_p8 = pneg %p2223_p6 }
  0x6c   : > { %p2231_p1 = pnand %p2230_p3, %p2224_p8 }
  0x6e   : > { %2234 = shalt.err (!%p2231_p1)
}
  0x6f   : > { %1894 = dma.hbm_to_vmem [thread:$0]  (!%p2581_p5), %s3486_s4, 16, %s346_s15, [#allocation8]  }
  0x70   : > { %s2438_s20 = smov [#allocation12]   ;;  %s2439_s28 = smov [#allocation13]  }
  0x71   : > { %s369_s16 = sshll.u32 %s2438_s20, 4  ;;  %s383_s12 = sshll.u32 %s2439_s28, 4  ;;  %s370_s16 = int_to_ptr.vmem [resolvable:$true] %s369_s16  ;;  %s384_s12 = int_to_ptr.vmem [resolvable:$true] %s383_s12 }
  0x72   : > { %s3487_s7 = sld [smem:[#allocation32_spill]] }
  0x78   : > { %s2235_s29 = scalar_lea.hbm %s3487_s7, 256 }
  0x79   : > { %p2236_p1 = scmp.ne.s32.totalorder %s3487_s7, %s2235_s29  ;;  %p2242_p12 = scmp.lt.u32.totalorder %s2235_s29, %s3487_s7 }
  0x7b   : > { %p2238_p3 = pnand %p2236_p1, %p2597_p7 }
  0x7d   : > { %p2239_p11 = pneg %p2238_p3 }
  0x7f   : > { %p2244_p13 = pnand %p2242_p12, %p2239_p11 }
  0x81   : > { %2247 = shalt.err (!%p2244_p13)
}
  0x82   : > { %s2248_s15 = scalar_lea.vmem %s370_s16, 256  ;;  %p2256_p6 = scmp.lt.s32.totalorder %s370_s16, %s370_s16 }
  0x83   : > { %p2249_p0 = scmp.ne.s32.totalorder %s370_s16, %s2248_s15  ;;  %p2257_p8 = scmp.lt.s32.totalorder %s2248_s15, %s2248_s15 }
  0x85   : > { %p2251_p2 = pnand %p2249_p0, %p2597_p7  ;;  %p2258_p9 = por %p2257_p8, %p2256_p6 }
  0x87   : > { %p2252_p4 = pneg %p2251_p2 }
  0x89   : > { %p2259_p10 = pnand %p2258_p9, %p2252_p4 }
  0x8b   : > { %2262 = shalt.err (!%p2259_p10)
}
  0x8c   : > { %s3488_s5 = smov 64   ;;  %s3489_s8 = sld [smem:[#allocation33_spill]] }
  0x8d   : > { %1900 = dma.hbm_to_vmem [thread:$0]  (!%p2581_p5), %s3487_s7, 256, %s370_s16, [#allocation11], %s3488_s5, %s3488_s5, %s2437_s25  }
  0x92   : > { %s2263_s10 = scalar_lea.hbm %s3489_s8, 16 }
  0x93   : > { %p2264_p1 = scmp.ne.s32.totalorder %s3489_s8, %s2263_s10  ;;  %p2270_p12 = scmp.lt.u32.totalorder %s2263_s10, %s3489_s8 }
  0x95   : > { %p2266_p3 = pnand %p2264_p1, %p2597_p7 }
  0x97   : > { %p2267_p11 = pneg %p2266_p3 }
  0x99   : > { %p2272_p13 = pnand %p2270_p12, %p2267_p11 }
  0x9b   : > { %2275 = shalt.err (!%p2272_p13)
}
  0x9c   : > { %s2276_s15 = scalar_lea.vmem %s384_s12, 16  ;;  %s2283_s25 = scalar_lea.vmem %s384_s12, 32 }
  0x9d   : > { %p2277_p0 = scmp.ne.s32.totalorder %s384_s12, %s2276_s15  ;;  %p2284_p6 = scmp.lt.s32.totalorder %s384_s12, %s384_s12 }
  0x9e   : > { %p2285_p8 = scmp.lt.s32.totalorder %s2283_s25, %s2276_s15 }
  0x9f   : > { %p2279_p2 = pnand %p2277_p0, %p2597_p7 }
  0xa0   : > { %p2286_p9 = por %p2285_p8, %p2284_p6 }
  0xa1   : > { %p2280_p4 = pneg %p2279_p2 }
  0xa3   : > { %p2287_p10 = pnand %p2286_p9, %p2280_p4 }
  0xa5   : > { %2290 = shalt.err (!%p2287_p10)
}
  0xa6   : > { %1903 = dma.hbm_to_vmem [thread:$0]  (!%p2581_p5), %s3489_s8, 16, %s384_s12, [#allocation14]  }
  0xa7   : > { %s1790_s21 = sadd.s32 4294967294, %s2431_s24   ;;  %s39_s11 = sadd.s32 1, %s2423_s22 }
  0xa8   : > { %s42_s30 = sadd.s32 1, %s2427_s23  ;;  %p40_p7 = scmp.ge.s32.totalorder %s39_s11, 2 }
  0xa9   : > { %s51_s20 = sadd.s32 1, %s2411_s19  ;;  %p58_p1 = scmp.ne.s32.totalorder %s2411_s19, %s2407_s18 }
  0xaa   : > { %p59_p3 = scmp.eq.s32.totalorder %s2431_s24, 0  ;;  %s3529_s11 = smov (%p40_p7, %s39_s11), 0 }
  0xab   : > { %s3531_s30 = smov (!%p40_p7, %s42_s30), %s2427_s23  ;;  %s47_s28 = ssub.s32 %s2423_s22, %s3529_s11 }
  0xac   : > { %p2715_p11 = por %p59_p3, %p58_p1  ;;  %p44_p5 = scmp.ge.s32.totalorder %s3531_s30, 2 }
  0xad   : > { %p64_p12 = scmp.ne.s32.totalorder %s2407_s18, %s2403_s17  ;;  %s3491_s12 = sadd.s32 4294967295, %s2431_s24  }
  0xae   : > { %p300_p13 = scmp.eq.s32.totalorder %s3491_s12, 3  ;;  %p306_p0 = scmp.eq.s32.totalorder %s1790_s21, 3 }
  0xaf   : > { %s3533_s30 = smov (%p44_p5, %s3531_s30), 0  ;;  %p3492_p2 = scmp.ne.s32.totalorder %s3480_s26, 0 }
  0xb0   : > { %p2731_p6 = por %p300_p13, %p58_p1  ;;  %s46_s2 = ssub.s32 %s2427_s23, %s3533_s30 }
  0xb1   : > { %p2727_p4 = por %p3492_p2, %p64_p12  ;;  %p2737_p8 = por %p306_p0, %p64_p12 }
  0xb2   : > { %s3494_s29 = scalar_select %p2731_p6, 1, 0 }
  0xb3   : > { %s3495_s13 = scalar_select %p2737_p8, 1, 0 }
  0xb4   : > { %s48_s1 = sor.u32 %s47_s28, %s46_s2  ;;  %p1917_p9 = scmp.lt.s32.totalorder %s2431_s24, 4 }
  0xb5   : > { %p49_p10 = scmp.eq.s32.totalorder %s48_s1, 0  ;;  %s400_s15 = sand.u32 1, %s2411_s19  }
  0xb6   : > { %s1798_s25 = sshll.u32 %s400_s15, 3  ;;  %s1799_s5 = sshll.u32 %s2427_s23, 1 }
  0xb7   : > { %s2744_s16 = scalar_select %p49_p10, %s2411_s19, %s51_s20  }
  0xb8   : > { %s409_s21 = sadd.s32 %s2423_s22, %s1799_s5  ;;  %s404_s12 = scalar_lea.vmem [#allocation4], %s1798_s25 }
  0xb9   : > { %s413_s3 = sshll.u32 %s404_s12, 4  ;;  %s1800_s4 = sshll.u32 %s409_s21, 7  ;;  %s2748_s3 = int_to_ptr.vmem [resolvable:$true] %s413_s3 }
  0xba   : > { %s2753_s8 = scalar_lea.hbm %s3441_s0, %s1800_s4  ;;  %p2757_p7 = pnand %p1917_p9, %p2715_p11 }
  0xbb   : > { %s401_s28 = scalar_lea.sflag [#allocation5], %s400_s15  ;;  %s2291_s2 = scalar_lea.hbm %s2753_s8, 128 }
  0xbc   : > { %p2292_p1 = scmp.ne.s32.totalorder %s2753_s8, %s2291_s2  ;;  %p2293_p3 = pneg %p2757_p7 }
  0xbd   : > { %s2296_s7 = scalar_lea.hbm %s3441_s0, 512  ;;  %p2297_p11 = scmp.lt.u32.totalorder %s2753_s8, %s3441_s0 }
  0xbe   : > { %p2294_p5 = pnand %p2293_p3, %p2292_p1  ;;  %p2298_p13 = scmp.lt.u32.totalorder %s2296_s7, %s2291_s2 }
  0xbf   : > { %p2300_p2 = scmp.lt.u32.totalorder %s2291_s2, %s2753_s8 }
  0xc0   : > { %p2295_p12 = pneg %p2294_p5  ;;  %p2299_p0 = por %p2298_p13, %p2297_p11 }
  0xc2   : > { %p2301_p9 = por %p2300_p2, %p2299_p0 }
  0xc4   : > { %p2302_p10 = pnand %p2301_p9, %p2295_p12 }
  0xc6   : > { %2305 = shalt.err (!%p2302_p10)
}
  0xc7   : > { %s2306_s15 = scalar_lea.vmem %s2748_s3, 128  ;;  %s2440_s25 = smov [#allocation4]  }
  0xc8   : > { %p2307_p1 = scmp.ne.s32.totalorder %s2748_s3, %s2306_s15  ;;  %s2311_s5 = sshll.u32 %s2440_s25, 4  ;;  %s2312_s5 = int_to_ptr.vmem [resolvable:$false] %s2311_s5 }
  0xc9   : > { %s2313_s21 = scalar_lea.vmem %s2312_s5, 256  ;;  %p2314_p6 = scmp.lt.s32.totalorder %s2748_s3, %s2312_s5 }
  0xca   : > { %p2309_p5 = pnand %p2307_p1, %p2293_p3  ;;  %p2315_p11 = scmp.lt.s32.totalorder %s2313_s21, %s2306_s15 }
  0xcc   : > { %p2310_p8 = pneg %p2309_p5  ;;  %p2316_p13 = por %p2315_p11, %p2314_p6 }
  0xce   : > { %p2317_p0 = pnand %p2316_p13, %p2310_p8 }
  0xd0   : > { %2320 = shalt.err (!%p2317_p0)
}
  0xd1   : > { %1907 = dma.hbm_to_vmem [thread:$0]  (!%p2757_p7), %s2753_s8, 128, %s2748_s3, %s401_s28  }
  0xd2   : > { %p3497_p12 = scmp.ne.s32.totalorder %s3481_s27, 0 }
  0xd4   : > { %422 = sbr.rel (%p3497_p12) target bundleno = 1962 (0x7aa), region = 64 }
  0xdb   : > { %s2789_s12 = sand.u32 1, %s2407_s18  }
  0xdc   : > { %s1802_s2 = sshll.u32 %s2789_s12, 3  ;;  %s425_s4 = scalar_lea.sflag [#allocation5], %s2789_s12 }
  0xdd   : > { %s428_s6 = scalar_lea.vmem [#allocation4], %s1802_s2 }
  0xde   : > { %2382 = dma.done.wait (%p2727_p4), %s425_s4, 128  }
  0xdf   : > { %2384 = vsyncadd (%p2727_p4), %s425_s4, 4294967168  ;;  %p3498_p6 = scmp.ne.s32.totalorder %s3480_s26, 0 }
  0xe1   : > { %2386 = dma.done.wait (%p3498_p6), [#allocation8], 272  }
  0xe2   : > { %2388 = vsyncadd (%p3498_p6), [#allocation8], 4294967024 }
  0xe3   : > { %2390 = dma.done.wait (%p3498_p6), [#allocation11], 272  }
  0xe4   : > { %2392 = vsyncadd (%p3498_p6), [#allocation11], 4294967024 }
  0xe5   : > { %2394 = dma.done.wait (%p3498_p6), [#allocation14], 16  }
  0xe6   : > { %2396 = vsyncadd (%p3498_p6), [#allocation14], 4294967280  ;;  %vm489_vm0 = vcmask 261120   ;;  %v2814_v0 = vld [vmem:[%s3450_s9] sm:$0xff]  ;;  %v2819_v1 = vld [vmem:[%s3450_s9 + $0x8] sm:$0xff]  ;;  %v2441_v10 = vmov 0.0  }
  0xe7   : > { %v2821_v2 = vld [vmem:[%s428_s6] sm:$0xff]  ;;  %v2015_v9 = vld [vmem:[#allocation7] sm:$0xff]   ;;  %1840 = vmatprep.subr.bf16.mxu0 %v2441_v10  ;;  %vm2442_vm1 = vmmov 0   ;;  %v2016_v11 = vld [vmem:[#allocation7 + $0x8] sm:$0xff]   ;;  %1848 = vmatprep.subr.bf16.mxu1 %v2441_v10  ;;  %s3500_s28 = sld [smem:[#allocation30_spill]]  ;;  %s3501_s1 = sld [smem:[#allocation26_spill]] }
  0xe8   : > { %3499 = vst [vmem:[#allocation23_spill] sm:$0xff] %v2821_v2  ;;  %v490_v3 = vsel %vm489_vm0, %v2821_v2, 0.0  ;;  %1844 = vmatprep.mubr.msk.bf16.mxu0 %vm2442_vm1, %v2441_v10  ;;  %1841 = vmatpush3.bf16.msra.mxu0 %v2015_v9  ;;  %s3502_s5 = sld [smem:[#allocation27_spill]]  ;;  %v1811_v24 = vld [vmem:[#allocation9] ss:$0 sm:$0xff]  ;;  %v2019_v36 = vld [vmem:[#allocation12] sm:$0xff]  }
  0xe9   : > { %491 = vadd.xlane.f32.xlu0 %v490_v3  ;;  %1842 = vmatprep.subr.bf16.mxu0 %v2441_v10  ;;  %v2020_v37 = vld [vmem:[#allocation12 + $0x8] sm:$0xff]   ;;  %v1816_v38 = vld [vmem:[#allocation10] ss:$0 sm:$0xff]  ;;  %s2443_s6 = smov 96   ;;  %v1823_v61 = vld [vmem:[#allocation13] ss:$0 sm:$0xff] }
  0xea   : > { %1852 = vmatprep.mubr.msk.bf16.mxu1 %vm2442_vm1, %v2441_v10  ;;  %s2876_s3 = scalar_lea.vmem [#allocation15], %s1802_s2  ;;  %s3505_s8 = sld [smem:[#allocation21_spill]] }
  0xec   : > { %1843 = vmatpush3.bf16.msra.mxu0 %v2016_v11 }
  0xed   : > { %1856 = vmatprep.subr.bf16.mxu0 %v2441_v10  ;;  %v2017_v12 = vld [vmem:[%s3500_s28] sm:$0xff]   ;;  %v2018_v23 = vld [vmem:[%s3500_s28 + $0x8] sm:$0xff]  }
  0xee   : > { %1849 = vmatpush3.bf16.msra.mxu1 %v2017_v12  ;;  %v1809_v17 = vld [vmem:[%s3501_s1] ss:$0 sm:$0xff] }
  0xef   : > { %1850 = vmatprep.subr.bf16.mxu1 %v2441_v10  ;;  %v1810_v19 = vld [vmem:[%s3502_s5] ss:$0 sm:$0xff] }
  0xf0   : > { %p1824_p4 = scmp.ne.s32.totalorder %s3505_s8, 0 }
  0xf2   : > { %1851 = vmatpush3.bf16.msra.mxu1 %v2018_v23 }
 0x176   : > { %v492_v4 = vpop.xlane.xlu0 %491 }
 0x177   : > { %v494_v5 = vmul.f32 0.03125, %v492_v4 }
 0x179   : > { %v495_v6 = vsub.f32 %v2821_v2, %v494_v5 }
 0x17b   : > { %v496_v7 = vmul.f32 %v495_v6, %v495_v6 }
 0x17d   : > { %v497_v8 = vsel %vm489_vm0, %v496_v7, 0.0 }
 0x17e   : > { %498 = vadd.xlane.f32.xlu0 %v497_v8 }
 0x20b   : > { %v499_v13 = vpop.xlane.xlu0 %498 }
 0x20c   : > { %v500_v14 = vmul.f32 0.03125, %v499_v13 }
 0x20e   : > { %v501_v15 = vadd.f32 1e-05, %v500_v14 }
 0x210   : > { %2021 = vrsqrt.f32 %v501_v15 }
 0x21a   : > { %v2022_v16 = vpop.eup %2021 }
 0x21b   : > { %v503_v18 = vmul.f32 %v2022_v16, %v495_v6 }
 0x21d   : > { %v511_v20 = vmul.f32 %v1809_v17, %v503_v18 }
 0x21f   : > { %v519_v21 = vadd.f32 %v1810_v19, %v511_v20 }
 0x221   : > { %v520_v22 = vpack.c.bf16 %v519_v21, %v519_v21 }
 0x223   : > { %1845 = vmatmul.mubr.msk.bf16.vlgmr.msra.gmra.mrb[0].mxu0 %vm489_vm0, %v520_v22 }
 0x224   : > { %1860 = vmatprep.mubr.msk.bf16.mxu0 %vm2442_vm1, %v2441_v10  ;;  %1857 = vmatpush3.bf16.msra.mxu0 %v2019_v36 }
 0x225   : > { %1858 = vmatprep.subr.bf16.mxu0 %v2441_v10 }
 0x228   : > { %1859 = vmatpush3.bf16.msra.mxu0 %v2020_v37 }
 0x2f6   : > { %v581_v25 = vpop.f32.mrb[0].mxu0 }
 0x2f7   : > { %v582_v26 = vadd.f32 %v1811_v24, %v581_v25  ;;  %v1846_v27 = vpop.f32.mrb[1].mxu0 }
 0x2f8   : > { %v584_v28 = vpop.f32.mrb[2].mxu0 }
 0x2f9   : > { %v1815_v29 = vmul.f32 -1.442695, %v582_v26  ;;  %v594_v30 = vpack.c.bf16 %v582_v26, %v582_v26  ;;  %v1847_v31 = vpop.f32.mrb[3].mxu0 }
 0x2fb   : > { %2023 = vpow2.f32 %v1815_v29  ;;  %1853 = vmatmul.mubr.msk.bf16.vlgmr.msra.gmra.mrb[0].mxu1 %vm489_vm0, %v594_v30 }
 0x305   : > { %v2024_v32 = vpop.eup %2023 }
 0x306   : > { %v590_v33 = vadd.f32 1.0, %v2024_v32 }
 0x308   : > { %2025 = vrcp.f32 %v590_v33 }
 0x312   : > { %v2026_v34 = vpop.eup %2025 }
 0x313   : > { %v2844_v35 = vmul.f32 %v2026_v34, %v582_v26 }
 0x315   : > { %3503 = vst [vmem:[#allocation24_spill] sm:$0xff] %v2844_v35 }
 0x3ce   : > { %v655_v39 = vpop.f32.mrb[0].mxu1 }
 0x3cf   : > { %v656_v40 = vadd.f32 %v1816_v38, %v655_v39  ;;  %v1854_v41 = vpop.f32.mrb[1].mxu1 }
 0x3d0   : > { %v658_v42 = vpop.f32.mrb[2].mxu1 }
 0x3d1   : > { %v664_v43 = vand.u32 2147483647, %v656_v40  ;;  %v1855_v44 = vpop.f32.mrb[3].mxu1  ;;  %v661_v55 = vmax.f32 %v656_v40, 0.0  ;;  %vm662_vm3 = vcmp.ne.f32.partialorder %v656_v40, %v656_v40 }
 0x3d3   : > { %v665_v45 = vsub.f32 0.0, %v664_v43 }
 0x3d5   : > { %v666_v46 = vmul.f32 1.442695, %v665_v45 }
 0x3d7   : > { %2027 = vpow2.f32 %v666_v46  ;;  %v2444_v46 = vmov (!%p1824_p4), 0.0  }
 0x3d8   : > { %837 = vst.msk [vmem:[#allocation2] sm:$0xff] (!%p1824_p4), %vm489_vm0, %v2444_v46  ;;  %838 = vst.msk [vmem:[#allocation2 + $0x8] sm:$0xff] (!%p1824_p4), %vm489_vm0, %v2444_v46 }
 0x3d9   : > { %839 = vst.msk [vmem:[#allocation3] sm:$0xff] (!%p1824_p4), %vm489_vm0, %v2444_v46  ;;  %840 = vst.msk [vmem:[#allocation3 + $0x8] sm:$0xff] (!%p1824_p4), %vm489_vm0, %v2444_v46 }
 0x3e1   : > { %v2028_v47 = vpop.eup %2027 }
 0x3e2   : > { %v668_v48 = vadd.f32 1.0, %v2028_v47  ;;  %v671_v49 = vmul.f32 -0.5, %v2028_v47  ;;  %v674_v51 = vand.u32 2147483647, %v2028_v47 }
 0x3e4   : > { %2029 = vlog2.f32 %v668_v48  ;;  %v672_v50 = vadd.f32 1.0, %v671_v49  ;;  %vm675_vm2 = vcmp.lt.f32.partialorder %v674_v51, 0.0004427343 }
 0x3e6   : > { %v673_v54 = vmul.f32 %v2028_v47, %v672_v50 }
 0x3ee   : > { %v2030_v52 = vpop.eup %2029 }
 0x3ef   : > { %v670_v53 = vmul.f32 0.6931472, %v2030_v52 }
 0x3f1   : > { %v676_v56 = vsel %vm675_vm2, %v673_v54, %v670_v53 }
 0x3f2   : > { %v677_v57 = vadd.f32 %v676_v56, %v661_v55 }
 0x3f4   : > { %v2846_v58 = vsel %vm662_vm3, %v656_v40, %v677_v57 }
 0x3f5   : > { %680 = vrot.lane.b32.xlu1 %v2846_v58, %s2443_s6 }
 0x467   : > { %v2849_v59 = vpop.permute.xlu1 %680 }
 0x468   : > { %3504 = vst [vmem:[#allocation25_spill] sm:$0xff] %v2849_v59  ;;  %v683_v60 = vpack.c.bf16 %v2849_v59, %v2846_v58 }
 0x46a   : > { %1861 = vmatmul.mubr.msk.bf16.vlgmr.msra.gmra.mrb[4].mxu0 %vm489_vm0, %v683_v60 }
 0x53d   : > { %v737_v62 = vpop.f32.mrb[4].mxu0 }
 0x53e   : > { %v751_v63 = vadd.f32 %v1823_v61, %v737_v62  ;;  %793 = vrot.lane.b32.xlu1 %v737_v62, %s2443_s6  ;;  %v1862_v3 = vpop.f32.mrb[5].mxu0 }
 0x53f   : > { %v740_v4 = vpop.f32.mrb[6].mxu0 }
 0x540   : > { %v759_v5 = vand.u32 2147483647, %v751_v63  ;;  %v752_v6 = vadd.f32 %v1823_v61, %v740_v4  ;;  %795 = vrot.lane.b32.xlu0 %v740_v4, %s2443_s6  ;;  %v1863_v7 = vpop.f32.mrb[7].mxu0  ;;  %v753_v27 = vmax.f32 %v751_v63, 0.0  ;;  %vm755_vm6 = vcmp.ne.f32.partialorder %v751_v63, %v751_v63 }
 0x542   : > { %v761_v8 = vsub.f32 0.0, %v759_v5  ;;  %v760_v9 = vand.u32 2147483647, %v752_v6  ;;  %v754_v32 = vmax.f32 %v752_v6, 0.0  ;;  %vm756_vm7 = vcmp.ne.f32.partialorder %v752_v6, %v752_v6 }
 0x544   : > { %v763_v10 = vmul.f32 1.442695, %v761_v8  ;;  %v762_v11 = vsub.f32 0.0, %v760_v9 }
 0x546   : > { %2031 = vpow2.f32 %v763_v10  ;;  %v765_v12 = vmul.f32 1.442695, %v762_v11 }
 0x548   : > { %2033 = vpow2.f32 %v765_v12 }
 0x550   : > { %v2032_v13 = vpop.eup %2031 }
 0x551   : > { %v767_v14 = vadd.f32 1.0, %v2032_v13  ;;  %v770_v17 = vmul.f32 -0.5, %v2032_v13  ;;  %v773_v20 = vand.u32 2147483647, %v2032_v13 }
 0x552   : > { %v2034_v15 = vpop.eup %2033 }
 0x553   : > { %2035 = vlog2.f32 %v767_v14  ;;  %v776_v16 = vadd.f32 1.0, %v2034_v15  ;;  %v779_v18 = vmul.f32 -0.5, %v2034_v15  ;;  %v771_v19 = vadd.f32 1.0, %v770_v17 }
 0x554   : > { %v782_v23 = vand.u32 2147483647, %v2034_v15  ;;  %vm774_vm4 = vcmp.lt.f32.partialorder %v773_v20, 0.0004427343 }
 0x555   : > { %2037 = vlog2.f32 %v776_v16  ;;  %v780_v21 = vadd.f32 1.0, %v779_v18  ;;  %v772_v25 = vmul.f32 %v2032_v13, %v771_v19 }
 0x556   : > { %vm783_vm5 = vcmp.lt.f32.partialorder %v782_v23, 0.0004427343 }
 0x557   : > { %v781_v30 = vmul.f32 %v2034_v15, %v780_v21 }
 0x55d   : > { %v2036_v22 = vpop.eup %2035 }
 0x55e   : > { %v769_v24 = vmul.f32 0.6931472, %v2036_v22 }
 0x55f   : > { %v2038_v26 = vpop.eup %2037 }
 0x560   : > { %v775_v28 = vsel %vm774_vm4, %v772_v25, %v769_v24  ;;  %v778_v29 = vmul.f32 0.6931472, %v2038_v26 }
 0x561   : > { %v785_v31 = vadd.f32 %v775_v28, %v753_v27 }
 0x562   : > { %v784_v33 = vsel %vm783_vm5, %v781_v30, %v778_v29 }
 0x563   : > { %v2854_v34 = vsel %vm755_vm6, %v751_v63, %v785_v31  ;;  %v786_v36 = vadd.f32 %v784_v33, %v754_v32 }
 0x564   : > { %v2858_v37 = vmul.f32 %v2854_v34, %v2846_v58 }
 0x565   : > { %v2860_v38 = vsel %vm756_vm7, %v752_v6, %v786_v36 }
 0x566   : > { %v2864_v39 = vmul.f32 %v2860_v38, %v2849_v59 }
 0x5b0   : > { %v794_v40 = vpop.permute.xlu1 %793 }
 0x5b1   : > { %799 = vxpose.xlu1.b32.start [1/2] (short) (narrow) %v794_v40, 32 }
 0x5b2   : > { %v796_v41 = vpop.permute.xlu0 %795 }
 0x5b5   : > { %800 = vxpose.xlu1.b32.end [2/2] (short) (narrow) %v796_v41, 32 }
 0x631   : > { %v2866_v42 = vpop.trf.xlu1 }
 0x635   : > { %v2868_v43 = vpop.trf.xlu1 }
 0x637   : > { %836 = sbr.rel (%p1824_p4) target bundleno = 1598 (0x63e), region = 92 }
 0x639   : > { %v2870_v44 = vpop.trf.xlu1 }
 0x63d   : > { %v2872_v45 = vpop.trf.xlu1 }
 0x63e PF: > { %v2445_v47 = vmov 1   ;;  %v2446_v48 = vmov 0   ;;  %v2447_v49 = vmov 2   ;;  %v2448_v50 = vmov 3   ;;  %v842_v27 = vld [vmem:[#allocation2 + $0x8] sm:$0xff]  ;;  %s3511_s2 = sld [smem:[#allocation22_spill]] }
 0x63f   : > { %2040 = vset.pattern.permute.xlu1 %v2445_v47  ;;  %2039 = vset.pattern.permute.xlu0 %v2446_v48  ;;  %v3464_v51 = vmov 6   ;;  %v2450_v52 = vmov 4   ;;  %v2451_v53 = vmov 9   ;;  %v2452_v54 = vmov 12   ;;  %s3512_s27 = sld [smem:[#allocation21_spill]]  ;;  %s3514_s20 = sld [smem:[#allocation34_spill]] }
 0x640   : > { %1022 = vperm.xlu1 %2040, %v2866_v42   ;;  %1007 = vperm.xlu0 %2039, %v2866_v42   ;;  %v2453_v55 = vmov 5   ;;  %v3461_v56 = vmov 15   ;;  %v2455_v57 = vmov 8   ;;  %v3462_v60 = vmov 7   ;;  %s1656_s15 = sshll.u32 %s2876_s3, 4  ;;  %s3517_s21 = sld [smem:[#allocation35_spill]]  ;;  %s3387_s15 = int_to_ptr.vmem [resolvable:$true] %s1656_s15 }
 0x641   : > { %v2457_v61 = vmov 10   ;;  %v2458_v62 = vmov 11   ;;  %v3465_v63 = vmov 13   ;;  %v3463_v3 = vmov 14   ;;  %s1641_s8 = scalar_lea.sflag [#allocation6], %s2789_s12  ;;  %p3519_p7 = scmp.ne.s32.totalorder %s3494_s29, 0 }
 0x642   : > { %v845_v4 = vlaneseq  ;;  %vm1613_vm8 = vcmask 1040384   ;;  %vm1615_vm9 = vcmask 1041408   ;;  %vm1617_vm10 = vcmask 1042432  }
 0x643   : > { %vm1619_vm11 = vcmask 1043456   ;;  %vm1621_vm12 = vcmask 1044480   ;;  %vm1623_vm13 = vcmask 1045504   ;;  %vm1625_vm14 = vcmask 1046528  }
 0x644   : > { %1026 = vperm.xlu1 %2040, %v2868_v43   ;;  %1012 = vperm.xlu0 %2039, %v2868_v43   ;;  %v2957_v5 = vshrl.u32 %v845_v4, 7  ;;  %s1827_s7 = sshll.u32 %s3511_s2, 1  ;;  %s2321_s2 = scalar_lea.vmem %s3387_s15, 128 }
 0x645   : > { %s1652_s14 = sadd.s32 %s3512_s27, %s1827_s7  ;;  %p2322_p8 = scmp.ne.s32.totalorder %s3387_s15, %s2321_s2 }
 0x646   : > { %v2960_v6 = vsub.s32 0, %v2957_v5  ;;  %v2969_v8 = vsub.s32 1, %v2957_v5  ;;  %v2978_v12 = vsub.s32 2, %v2957_v5  ;;  %v2984_v14 = vsub.s32 3, %v2957_v5  ;;  %s1828_s1 = sshll.u32 %s1652_s14, 7  ;;  %s3518_s4 = smov %s3517_s21 }
 0x647   : > { %v2999_v19 = vsub.s32 4, %v2957_v5  ;;  %v3009_v23 = vsub.s32 5, %v2957_v5  ;;  %s3385_s6 = scalar_lea.hbm %s3517_s21, %s1828_s1  ;;  %p2323_p3 = pnand %p2322_p8, %p3519_p7 }
 0x648   : > { %2041 = vset.pattern.permute.xlu1 %v2447_v49  ;;  %2043 = vset.pattern.permute.xlu0 %v2448_v50  ;;  %v848_v7 = vrot.slane %v2854_v34, %v2960_v6  ;;  %v2975_v10 = vrot.slane %v2854_v34, %v2969_v8  ;;  %v2988_v15 = vrot.slane %v2854_v34, %v2978_v12  ;;  %s2461_s27 = smov [#allocation15]  }
 0x649   : > { %1040 = vperm.xlu1 %2041, %v2868_v43   ;;  %1054 = vperm.xlu0 %2043, %v2868_v43   ;;  %v2995_v18 = vrot.slane %v2854_v34, %v2984_v14  ;;  %v3006_v22 = vrot.slane %v2854_v34, %v2999_v19  ;;  %v3019_v29 = vrot.slane %v2858_v37, %v2960_v6  ;;  %p2324_p2 = pneg %p2323_p3  ;;  %s2325_s10 = sshll.u32 %s2461_s27, 4  ;;  %s2326_s10 = int_to_ptr.vmem [resolvable:$false] %s2325_s10 }
 0x64a   : > { %v850_v9 = vmul.f32 %v848_v7, %v2819_v1  ;;  %v860_v13 = vmul.f32 %v2975_v10, %v2819_v1  ;;  %v870_v17 = vmul.f32 %v2988_v15, %v2819_v1  ;;  %v3025_v32 = vrot.slane %v2854_v34, %v3009_v23  ;;  %s2327_s26 = scalar_lea.vmem %s2326_s10, 256  ;;  %p2328_p9 = scmp.lt.s32.totalorder %s3387_s15, %s2326_s10 }
 0x64b   : > { %v880_v21 = vmul.f32 %v2995_v18, %v2819_v1  ;;  %v890_v31 = vmul.f32 %v3006_v22, %v2819_v1  ;;  %p2329_p10 = scmp.lt.s32.totalorder %s2327_s26, %s2321_s2 }
 0x64c   : > { %v853_v11 = vmul.f32 1.442695, %v850_v9  ;;  %v863_v16 = vmul.f32 1.442695, %v860_v13  ;;  %v873_v20 = vmul.f32 1.442695, %v870_v17  ;;  %v849_v13 = vmul.f32 %v848_v7, %v2814_v0 }
 0x64d   : > { %2042 = vset.pattern.permute.xlu1 %v2448_v50  ;;  %2047 = vset.pattern.permute.xlu0 %v3464_v51  ;;  %v883_v28 = vmul.f32 1.442695, %v880_v21  ;;  %p2330_p1 = por %p2329_p10, %p2328_p9 }
 0x64e   : > { %1050 = vperm.xlu1 %2042, %v2866_v42   ;;  %1096 = vperm.xlu0 %2047, %v2868_v43   ;;  %2087 = vpow2.f32 %v853_v11 }
 0x64f   : > { %2089 = vpow2.f32 %v863_v16  ;;  %p2331_p5 = pnand %p2330_p1, %p2324_p2 }
 0x650   : > { %2091 = vpow2.f32 %v873_v20 }
 0x651   : > { %2093 = vpow2.f32 %v883_v28 }
 0x652   : > { %2044 = vset.pattern.permute.xlu1 %v2450_v52  ;;  %2051 = vset.pattern.permute.xlu0 %v2451_v53 }
 0x653   : > { %1064 = vperm.xlu1 %2044, %v2866_v42   ;;  %1138 = vperm.xlu0 %2051, %v2868_v43  }
 0x657   : > { %1068 = vperm.xlu1 %2044, %v2868_v43   ;;  %2055 = vset.pattern.permute.xlu0 %v2452_v54 }
 0x658   : > { %1180 = vperm.xlu0 %2055, %v2868_v43   ;;  %v2088_v24 = vpop.eup %2087 }
 0x659   : > { %v1232_v30 = vmul.f32 %v2088_v24, %v842_v27  ;;  %v2090_v41 = vpop.eup %2089 }
 0x65a   : > { %v2092_v9 = vpop.eup %2091 }
 0x65b   : > { %2045 = vset.pattern.permute.xlu1 %v2453_v55  ;;  %v2094_v27 = vpop.eup %2093 }
 0x65c   : > { %1082 = vperm.xlu1 %2045, %v2868_v43   ;;  %2059 = vset.pattern.permute.xlu0 %v3461_v56 }
 0x65d   : > { %1222 = vperm.xlu0 %2059, %v2868_v43  }
 0x660   : > { %2046 = vset.pattern.permute.xlu1 %v3464_v51 }
 0x661   : > { %1092 = vperm.xlu1 %2046, %v2866_v42   ;;  %2060 = vset.pattern.permute.xlu0 %v2455_v57 }
 0x662   : > { %1120 = vperm.xlu0 %2060, %v2866_v42  }
 0x665   : > { %2048 = vset.pattern.permute.xlu1 %v3462_v60 }
 0x666   : > { %1106 = vperm.xlu1 %2048, %v2866_v42   ;;  %1261 = vperm.xlu0 %2060, %v2870_v44  }
 0x66a   : > { %1110 = vperm.xlu1 %2048, %v2868_v43   ;;  %2064 = vset.pattern.permute.xlu0 %v2445_v47 }
 0x66b   : > { %1293 = vperm.xlu0 %2064, %v2872_v45  }
 0x66e   : > { %2049 = vset.pattern.permute.xlu1 %v2455_v57 }
 0x66f   : > { %1124 = vperm.xlu1 %2049, %v2868_v43   ;;  %2065 = vset.pattern.permute.xlu0 %v2447_v49 }
 0x670   : > { %1036 = vperm.xlu0 %2065, %v2866_v42  }
 0x673   : > { %2050 = vset.pattern.permute.xlu1 %v2451_v53 }
 0x674   : > { %1134 = vperm.xlu1 %2050, %v2866_v42   ;;  %1336 = vperm.xlu0 %2065, %v2870_v44  }
 0x678   : > { %2052 = vset.pattern.permute.xlu1 %v2457_v61  ;;  %2069 = vset.pattern.permute.xlu0 %v2457_v61 }
 0x679   : > { %1148 = vperm.xlu1 %2052, %v2866_v42   ;;  %1359 = vperm.xlu0 %2069, %v2872_v45  }
 0x67d   : > { %1152 = vperm.xlu1 %2052, %v2868_v43   ;;  %2070 = vset.pattern.permute.xlu0 %v2458_v62 }
 0x67e   : > { %1162 = vperm.xlu0 %2070, %v2866_v42  }
 0x681   : > { %2053 = vset.pattern.permute.xlu1 %v2458_v62 }
 0x682   : > { %1166 = vperm.xlu1 %2053, %v2868_v43   ;;  %1402 = vperm.xlu0 %2070, %v2870_v44  }
 0x686   : > { %2054 = vset.pattern.permute.xlu1 %v2452_v54  ;;  %2074 = vset.pattern.permute.xlu0 %v2450_v52 }
 0x687   : > { %1176 = vperm.xlu1 %2054, %v2866_v42   ;;  %1434 = vperm.xlu0 %2074, %v2872_v45  }
 0x68b   : > { %2056 = vset.pattern.permute.xlu1 %v3465_v63  ;;  %2075 = vset.pattern.permute.xlu0 %v2453_v55 }
 0x68c   : > { %1190 = vperm.xlu1 %2056, %v2866_v42   ;;  %1078 = vperm.xlu0 %2075, %v2866_v42  }
 0x690   : > { %1194 = vperm.xlu1 %2056, %v2868_v43   ;;  %1477 = vperm.xlu0 %2075, %v2870_v44  }
 0x694   : > { %2057 = vset.pattern.permute.xlu1 %v3463_v3  ;;  %2079 = vset.pattern.permute.xlu0 %v3465_v63 }
 0x695   : > { %1208 = vperm.xlu1 %2057, %v2868_v43   ;;  %1500 = vperm.xlu0 %2079, %v2872_v45   ;;  %v3035_v43 = vrot.slane %v2858_v37, %v2969_v8 }
 0x699   : > { %2058 = vset.pattern.permute.xlu1 %v3461_v56  ;;  %2080 = vset.pattern.permute.xlu0 %v3463_v3 }
 0x69a   : > { %1218 = vperm.xlu1 %2058, %v2866_v42   ;;  %1204 = vperm.xlu0 %2080, %v2866_v42   ;;  %v3031_v42 = vsub.s32 6, %v2957_v5 }
 0x69c   : > { %v3052_v11 = vrot.slane %v2854_v34, %v3031_v42 }
 0x69e   : > { %2061 = vset.pattern.permute.xlu1 %v2446_v48  ;;  %1543 = vperm.xlu0 %2080, %v2870_v44   ;;  %v900_v48 = vmul.f32 %v3025_v32, %v2819_v1 }
 0x69f   : > { %1241 = vperm.xlu1 %2061, %v2870_v44  }
 0x6a0   : > { %v903_v17 = vmul.f32 1.442695, %v900_v48 }
 0x6a2   : > { %2084 = vset.pattern.permute.xlu0 %v3462_v60 }
 0x6a3   : > { %1246 = vperm.xlu1 %2061, %v2872_v45   ;;  %1575 = vperm.xlu0 %2084, %v2872_v45  }
 0x6a7   : > { %2062 = vset.pattern.permute.xlu1 %v2455_v57  ;;  %2086 = vset.pattern.permute.xlu0 %v3461_v56  ;;  %v843_v56 = vld [vmem:[#allocation3] sm:$0xff] }
 0x6a8   : > { %1265 = vperm.xlu1 %2062, %v2872_v45  }
 0x6ac   : > { %2063 = vset.pattern.permute.xlu1 %v2445_v47  ;;  %v893_v47 = vmul.f32 1.442695, %v890_v31  ;;  %v910_v31 = vmul.f32 %v3052_v11, %v2819_v1 }
 0x6ad   : > { %1289 = vperm.xlu1 %2063, %v2870_v44  }
 0x6ae   : > { %2095 = vpow2.f32 %v893_v47 }
 0x6af   : > { %2097 = vpow2.f32 %v903_v17 }
 0x6b1   : > { %2066 = vset.pattern.permute.xlu1 %v2451_v53 }
 0x6b2   : > { %1308 = vperm.xlu1 %2066, %v2870_v44  }
 0x6b6   : > { %1312 = vperm.xlu1 %2066, %v2872_v45  }
 0x6ba   : > { %2067 = vset.pattern.permute.xlu1 %v2447_v49  ;;  %v928_v49 = vrot.slane %v2860_v38, %v2960_v6 }
 0x6bb   : > { %1340 = vperm.xlu1 %2067, %v2872_v45  }
 0x6bc   : > { %v929_v20 = vmul.f32 %v928_v49, %v2814_v0 }
 0x6be   : > { %v931_v47 = vmul.f32 1.442695, %v929_v20 }
 0x6bf   : > { %v3011_v25 = vpop.permute.xlu1 %1022  ;;  %2068 = vset.pattern.permute.xlu1 %v2457_v61  ;;  %v3014_v26 = vpop.permute.xlu0 %1007  ;;  %v3047_v61 = vrot.slane %v2858_v37, %v2978_v12 }
 0x6c0   : > { %1355 = vperm.xlu1 %2068, %v2870_v44   ;;  %v1019_v51 = vmul.f32 %v3019_v29, %v3014_v26 }
 0x6c3   : > { %v1027_v33 = vpop.permute.xlu1 %1026  ;;  %v1013_v36 = vpop.permute.xlu0 %1012 }
 0x6c4   : > { %v1020_v40 = vmul.f32 %v3019_v29, %v1013_v36  ;;  %2071 = vset.pattern.permute.xlu1 %v2448_v50  ;;  %v1034_v50 = vmul.f32 %v3035_v43, %v1027_v33  ;;  %v3072_v33 = vsub.s32 7, %v2957_v5  ;;  %v851_v36 = vmul.f32 1.442695, %v849_v13 }
 0x6c5   : > { %1383 = vperm.xlu1 %2071, %v2870_v44  }
 0x6c6   : > { %v3037_v46 = vadd.f32 %v1232_v30, %v1020_v40  ;;  %v3064_v30 = vrot.slane %v2858_v37, %v2984_v14  ;;  %2099 = vpow2.f32 %v851_v36 }
 0x6c7   : > { %2101 = vpow2.f32 %v931_v47 }
 0x6c8   : > { %v1281_v53 = vmul.f32 %v2090_v41, %v3037_v46  ;;  %v1041_v57 = vpop.permute.xlu1 %1040  ;;  %v1055_v4 = vpop.permute.xlu0 %1054 }
 0x6c9   : > { %1387 = vperm.xlu1 %2071, %v2872_v45   ;;  %v1048_v21 = vmul.f32 %v3047_v61, %v1041_v57  ;;  %v1062_v41 = vmul.f32 %v3064_v30, %v1055_v4  ;;  %v859_v57 = vmul.f32 %v2975_v10, %v2814_v0  ;;  %v2096_v4 = vpop.eup %2095 }
 0x6ca   : > { %v3055_v16 = vadd.f32 %v1281_v53, %v1034_v50  ;;  %v3081_v50 = vrot.slane %v2854_v34, %v3072_v33  ;;  %v3095_v34 = vrot.slane %v2858_v37, %v2999_v19 }
 0x6cb   : > { %v861_v17 = vmul.f32 1.442695, %v859_v57 }
 0x6cc   : > { %v1328_v24 = vmul.f32 %v2092_v9, %v3055_v16  ;;  %v920_v13 = vmul.f32 %v3081_v50, %v2819_v1 }
 0x6cd   : > { %v3060_v28 = vpop.permute.xlu1 %1050  ;;  %2072 = vset.pattern.permute.xlu1 %v2458_v62  ;;  %v3067_v7 = vpop.permute.xlu0 %1096  ;;  %v913_v62 = vmul.f32 1.442695, %v910_v31  ;;  %v930_v31 = vmul.f32 %v928_v49, %v2819_v1 }
 0x6ce   : > { %v3074_v40 = vadd.f32 %v1328_v24, %v1048_v21  ;;  %1406 = vperm.xlu1 %2072, %v2872_v45   ;;  %v2098_v24 = vpop.eup %2097  ;;  %v923_v47 = vmul.f32 1.442695, %v920_v13 }
 0x6cf   : > { %2103 = vpow2.f32 %v913_v62  ;;  %v869_v62 = vmul.f32 %v2988_v15, %v2814_v0  ;;  %v3130_v15 = vrot.slane %v2864_v39, %v2960_v6 }
 0x6d0   : > { %v1375_v48 = vmul.f32 %v2094_v27, %v3074_v40  ;;  %v3107_v27 = vrot.slane %v2858_v37, %v3009_v23  ;;  %2105 = vpow2.f32 %v861_v17  ;;  %v2100_v57 = vpop.eup %2099  ;;  %v3124_v17 = vrot.slane %v2858_v37, %v3031_v42 }
 0x6d1   : > { %2107 = vpow2.f32 %v923_v47  ;;  %v871_v3 = vmul.f32 1.442695, %v869_v62 }
 0x6d2   : > { %v3083_v53 = vpop.permute.xlu1 %1064  ;;  %2073 = vset.pattern.permute.xlu1 %v2450_v52  ;;  %v3086_v5 = vpop.permute.xlu0 %1138  ;;  %v3090_v9 = vadd.f32 %v1375_v48, %v1062_v41  ;;  %v938_v41 = vrot.slane %v2860_v38, %v2969_v8  ;;  %v1104_v62 = vmul.f32 %v3124_v17, %v3067_v7 }
 0x6d3   : > { %1430 = vperm.xlu1 %2073, %v2870_v44  }
 0x6d4   : > { %v1422_v10 = vmul.f32 %v2096_v4, %v3090_v9  ;;  %v841_v4 = vld [vmem:[#allocation2] sm:$0xff]  ;;  %v939_v13 = vmul.f32 %v938_v41, %v2814_v0 }
 0x6d5   : > { %v1231_v60 = vmul.f32 %v2100_v57, %v841_v4 }
 0x6d6   : > { %v1069_v52 = vpop.permute.xlu1 %1068 }
 0x6d7   : > { %v1076_v20 = vmul.f32 %v3095_v34, %v1069_v52  ;;  %2076 = vset.pattern.permute.xlu1 %v2452_v54  ;;  %v3102_v21 = vpop.permute.xlu0 %1180  ;;  %v3146_v29 = vadd.f32 %v1231_v60, %v1019_v51  ;;  %v879_v51 = vmul.f32 %v2995_v18, %v2814_v0  ;;  %v1033_v18 = vmul.f32 %v3035_v43, %v3011_v25 }
 0x6d8   : > { %1449 = vperm.xlu1 %2076, %v2870_v44  }
 0x6d9   : > { %v3110_v36 = vadd.f32 %v1422_v10, %v1076_v20  ;;  %v933_v20 = vmul.f32 1.442695, %v930_v31  ;;  %v2102_v10 = vpop.eup %2101  ;;  %v948_v31 = vrot.slane %v2860_v38, %v2978_v12  ;;  %v881_v2 = vmul.f32 1.442695, %v879_v51 }
 0x6da   : > { %v1235_v63 = vmul.f32 %v2102_v10, %v843_v56  ;;  %v1144_v51 = vrot.slane %v2864_v39, %v2969_v8 }
 0x6db   : > { %v1083_v48 = vpop.permute.xlu1 %1082  ;;  %v1469_v54 = vmul.f32 %v2098_v24, %v3110_v36  ;;  %2109 = vpow2.f32 %v933_v20  ;;  %v949_v26 = vmul.f32 %v948_v31, %v2814_v0 }
 0x6dc   : > { %v1090_v52 = vmul.f32 %v3107_v27, %v1083_v48  ;;  %1453 = vperm.xlu1 %2076, %v2872_v45   ;;  %v3119_v49 = vpop.permute.xlu0 %1222  ;;  %v2104_v48 = vpop.eup %2103  ;;  %2111 = vpow2.f32 %v871_v3 }
 0x6dd   : > { %v2106_v20 = vpop.eup %2105  ;;  %v951_v3 = vmul.f32 1.442695, %v949_v26 }
 0x6de   : > { %v3126_v24 = vadd.f32 %v1469_v54, %v1090_v52  ;;  %v940_v54 = vmul.f32 %v938_v41, %v2819_v1  ;;  %v941_v52 = vmul.f32 1.442695, %v939_v13  ;;  %v958_v41 = vrot.slane %v2860_v38, %v2984_v14 }
 0x6df   : > { %v3506_v13 = vmov 13  }
 0x6e0   : > { %v3136_v47 = vpop.permute.xlu1 %1092  ;;  %2077 = vset.pattern.permute.xlu1 %v2453_v55  ;;  %v1516_v57 = vmul.f32 %v2104_v48, %v3126_v24  ;;  %v943_v56 = vmul.f32 1.442695, %v940_v54  ;;  %2113 = vpow2.f32 %v941_v52  ;;  %v950_v54 = vmul.f32 %v948_v31, %v2819_v1  ;;  %v844_v31 = vld [vmem:[#allocation3 + $0x8] sm:$0xff] }
 0x6e1   : > { %1481 = vperm.xlu1 %2077, %v2872_v45   ;;  %v1121_v6 = vpop.permute.xlu0 %1120  ;;  %v959_v52 = vmul.f32 %v958_v41, %v2814_v0  ;;  %v960_v25 = vmul.f32 %v958_v41, %v2819_v1  ;;  %v968_v41 = vrot.slane %v2860_v38, %v2999_v19 }
 0x6e2   : > { %v1131_v4 = vmul.f32 %v3130_v15, %v1121_v6  ;;  %v3158_v60 = vadd.f32 %v1516_v57, %v1104_v62  ;;  %v1280_v6 = vmul.f32 %v2106_v20, %v3146_v29  ;;  %2115 = vpow2.f32 %v943_v56 }
 0x6e3   : > { %v3507_v57 = vmov 6   ;;  %2117 = vpow2.f32 %v951_v3  ;;  %v953_v56 = vmul.f32 1.442695, %v950_v54  ;;  %v961_v43 = vmul.f32 1.442695, %v959_v52 }
 0x6e4   : > { %v1237_v55 = vadd.f32 %v1235_v63, %v1131_v4  ;;  %v2108_v63 = vpop.eup %2107  ;;  %v3164_v4 = vrot.slane %v2858_v37, %v3072_v33  ;;  %v3176_v35 = vadd.f32 %v1280_v6, %v1033_v18  ;;  %2119 = vpow2.f32 %v881_v2 }
 0x6e5   : > { %v3150_v10 = vpop.permute.xlu1 %1106  ;;  %2078 = vset.pattern.permute.xlu1 %v3506_v13  ;;  %v1262_v7 = vpop.permute.xlu0 %1261  ;;  %v1563_v20 = vmul.f32 %v2108_v63, %v3158_v60  ;;  %2121 = vpow2.f32 %v953_v56  ;;  %v889_v6 = vmul.f32 %v3006_v22, %v2814_v0  ;;  %v963_v52 = vmul.f32 1.442695, %v960_v25 }
 0x6e6   : > { %1496 = vperm.xlu1 %2078, %v2870_v44   ;;  %v3154_v48 = vmul.f32 %v1262_v7, %v1237_v55  ;;  %v2110_v7 = vpop.eup %2109  ;;  %2123 = vpow2.f32 %v961_v43  ;;  %v970_v22 = vmul.f32 %v968_v41, %v2819_v1  ;;  %v1146_v25 = vmul.f32 %v1144_v51, %v3086_v5 }
 0x6e7   : > { %v1236_v59 = vmul.f32 %v2110_v7, %v844_v31  ;;  %2125 = vpow2.f32 %v963_v52  ;;  %v1158_v43 = vrot.slane %v2864_v39, %v2978_v12  ;;  %v3509_v52 = vmov 7  }
 0x6e9   : > { %v1111_v13 = vpop.permute.xlu1 %1110 }
 0x6ea   : > { %v1118_v62 = vmul.f32 %v3164_v4, %v1111_v13  ;;  %2081 = vset.pattern.permute.xlu1 %v3507_v57  ;;  %v1294_v26 = vpop.permute.xlu0 %1293  ;;  %v2112_v57 = vpop.eup %2111 }
 0x6eb   : > { %v3173_v37 = vmul.f32 %v1294_v26, %v3055_v16  ;;  %1524 = vperm.xlu1 %2081, %v2870_v44   ;;  %v2114_v16 = vpop.eup %2113  ;;  %v1327_v2 = vmul.f32 %v2112_v57, %v3176_v35  ;;  %v899_v26 = vmul.f32 %v3025_v32, %v2814_v0 }
 0x6ec   : > { %v3179_v13 = vadd.f32 %v1563_v20, %v1118_v62  ;;  %v2116_v18 = vpop.eup %2115  ;;  %v3508_v20 = vmov 14  }
 0x6ee   : > { %v1125_v63 = vpop.permute.xlu1 %1124  ;;  %1610 = vst.msk [vmem:[#allocation2 + $0x8] sm:$0xff] %vm489_vm0, %v3179_v13 }
 0x6ef   : > { %v1132_v3 = vmul.f32 %v3130_v15, %v1125_v63  ;;  %1528 = vperm.xlu1 %2081, %v2872_v45   ;;  %v1037_v54 = vpop.permute.xlu0 %1036  ;;  %v1284_v15 = vmul.f32 %v2114_v16, %v1237_v55  ;;  %v891_v63 = vmul.f32 1.442695, %v889_v6  ;;  %v2118_v55 = vpop.eup %2117  ;;  %v978_v16 = vrot.slane %v2860_v38, %v3009_v23 }
 0x6f0   : > { %v1047_v8 = vmul.f32 %v3047_v61, %v1037_v54  ;;  %v973_v6 = vmul.f32 1.442695, %v970_v22  ;;  %v909_v22 = vmul.f32 %v3052_v11, %v2814_v0  ;;  %v1061_v11 = vmul.f32 %v3064_v30, %v3060_v28 }
 0x6f1   : > { %v3193_v7 = vadd.f32 %v1236_v59, %v1132_v3  ;;  %v969_v59 = vmul.f32 %v968_v41, %v2814_v0  ;;  %v901_v3 = vmul.f32 1.442695, %v899_v26  ;;  %2127 = vpow2.f32 %v891_v63 }
 0x6f2   : > { %v1329_v62 = vadd.f32 %v1327_v2, %v1047_v8  ;;  %v2120_v8 = vpop.eup %2119  ;;  %v1172_v26 = vrot.slane %v2864_v39, %v2984_v14 }
 0x6f3   : > { %v1135_v31 = vpop.permute.xlu1 %1134  ;;  %2082 = vset.pattern.permute.xlu1 %v3508_v20  ;;  %v1337_v56 = vpop.permute.xlu0 %1336  ;;  %v1285_v32 = vmul.f32 %v2116_v18, %v3193_v7  ;;  %2129 = vpow2.f32 %v901_v3  ;;  %v980_v20 = vmul.f32 %v978_v16, %v2819_v1 }
 0x6f4   : > { %v1145_v61 = vmul.f32 %v1144_v51, %v1135_v31  ;;  %v3199_v54 = vmul.f32 %v1337_v56, %v1329_v62  ;;  %1547 = vperm.xlu1 %2082, %v2872_v45   ;;  %v971_v51 = vmul.f32 1.442695, %v969_v59  ;;  %v2122_v18 = vpop.eup %2121  ;;  %2131 = vpow2.f32 %v973_v6 }
 0x6f5   : > { %v3214_v12 = vadd.f32 %v1285_v32, %v1146_v25  ;;  %v1374_v63 = vmul.f32 %v2120_v8, %v1329_v62  ;;  %v988_v59 = vrot.slane %v2860_v38, %v3031_v42  ;;  %v3510_v32 = vmov 15  }
 0x6f6   : > { %v3207_v57 = vadd.f32 %v1284_v15, %v1145_v61  ;;  %v2124_v15 = vpop.eup %2123  ;;  %2133 = vpow2.f32 %v971_v51  ;;  %v983_v8 = vmul.f32 1.442695, %v980_v20  ;;  %v919_v51 = vmul.f32 %v3081_v50, %v2814_v0 }
 0x6f7   : > { %v1332_v25 = vmul.f32 %v2122_v18, %v3214_v12  ;;  %v2126_v6 = vpop.eup %2125  ;;  %v998_v18 = vrot.slane %v2860_v38, %v3072_v33 }
 0x6f8   : > { %v1149_v2 = vpop.permute.xlu1 %1148  ;;  %v1331_v41 = vmul.f32 %v2118_v55, %v3207_v57  ;;  %2083 = vset.pattern.permute.xlu1 %v3509_v52  ;;  %v1360_v5 = vpop.permute.xlu0 %1359  ;;  %v911_v52 = vmul.f32 1.442695, %v909_v22  ;;  %2135 = vpow2.f32 %v983_v8  ;;  %v921_v22 = vmul.f32 1.442695, %v919_v51 }
 0x6f9   : > { %v1159_v31 = vmul.f32 %v1158_v43, %v1149_v2  ;;  %1571 = vperm.xlu1 %2083, %v2870_v44   ;;  %v979_v2 = vmul.f32 %v978_v16, %v2814_v0  ;;  %v1000_v38 = vmul.f32 %v998_v18, %v2819_v1 }
 0x6fa   : > { %2137 = vpow2.f32 %v911_v52 }
 0x6fb   : > { %v3219_v56 = vadd.f32 %v1331_v41, %v1159_v31  ;;  %v990_v41 = vmul.f32 %v988_v59, %v2819_v1  ;;  %v3237_v31 = vadd.f32 %v1374_v63, %v1061_v11 }
 0x6fc   : > { %v1153_v61 = vpop.permute.xlu1 %1152 }
 0x6fd   : > { %v1160_v55 = vmul.f32 %v1158_v43, %v1153_v61  ;;  %2085 = vset.pattern.permute.xlu1 %v3510_v32  ;;  %v1163_v14 = vpop.permute.xlu0 %1162  ;;  %v1378_v3 = vmul.f32 %v2124_v15, %v3219_v56  ;;  %v2128_v15 = vpop.eup %2127  ;;  %v981_v32 = vmul.f32 1.442695, %v979_v2  ;;  %v993_v50 = vmul.f32 1.442695, %v990_v41 }
 0x6fe   : > { %v1173_v62 = vmul.f32 %v1172_v26, %v1163_v14  ;;  %1590 = vperm.xlu1 %2085, %v2870_v44   ;;  %v2130_v63 = vpop.eup %2129 }
 0x6ff   : > { %v1334_v43 = vadd.f32 %v1332_v25, %v1160_v55  ;;  %v1186_v55 = vrot.slane %v2864_v39, %v2999_v19  ;;  %2139 = vpow2.f32 %v981_v32  ;;  %v1003_v19 = vmul.f32 1.442695, %v1000_v38 }
 0x700   : > { %v1380_v16 = vadd.f32 %v1378_v3, %v1173_v62  ;;  %v2132_v3 = vpop.eup %2131  ;;  %2141 = vpow2.f32 %v993_v50  ;;  %v1103_v50 = vmul.f32 %v3124_v17, %v3136_v47  ;;  %v1228_v17 = vrot.slane %v2864_v39, %v3072_v33 }
 0x701   : > { %v1167_v61 = vpop.permute.xlu1 %1166  ;;  %v1379_v28 = vmul.f32 %v2126_v6, %v1334_v43  ;;  %v1403_v30 = vpop.permute.xlu0 %1402  ;;  %v3239_v44 = vmul.f32 %v1360_v5, %v1334_v43  ;;  %v1421_v5 = vmul.f32 %v2128_v15, %v3237_v31  ;;  %2143 = vpow2.f32 %v921_v22 }
 0x702   : > { %v1174_v20 = vmul.f32 %v1172_v26, %v1167_v61  ;;  %v3241_v14 = vmul.f32 %v1403_v30, %v1380_v16  ;;  %1594 = vperm.xlu1 %2085, %v2872_v45   ;;  %v989_v26 = vmul.f32 %v988_v59, %v2814_v0  ;;  %v2134_v2 = vpop.eup %2133  ;;  %v1075_v45 = vmul.f32 %v3095_v34, %v3083_v53 }
 0x703   : > { %v1188_v62 = vmul.f32 %v1186_v55, %v3102_v21  ;;  %v999_v59 = vmul.f32 %v998_v18, %v2814_v0  ;;  %2145 = vpow2.f32 %v1003_v19  ;;  %v2136_v34 = vpop.eup %2135  ;;  %v1425_v15 = vmul.f32 %v2134_v2, %v1380_v16 }
 0x704   : > { %v3247_v25 = vadd.f32 %v1379_v28, %v1174_v20  ;;  %v3258_v41 = vadd.f32 %v1421_v5, %v1075_v45  ;;  %v991_v43 = vmul.f32 1.442695, %v989_v26  ;;  %v2138_v21 = vpop.eup %2137  ;;  %v1200_v0 = vrot.slane %v2864_v39, %v3009_v23 }
 0x705   : > { %v1001_v30 = vmul.f32 1.442695, %v999_v59  ;;  %v1214_v26 = vrot.slane %v2864_v39, %v3031_v42  ;;  %v1117_v47 = vmul.f32 %v3164_v4, %v3150_v10 }
 0x706   : > { %v1177_v6 = vpop.permute.xlu1 %1176  ;;  %v1435_v11 = vpop.permute.xlu0 %1434  ;;  %v1426_v8 = vmul.f32 %v2132_v3, %v3247_v25  ;;  %v1468_v61 = vmul.f32 %v2130_v63, %v3258_v41  ;;  %2147 = vpow2.f32 %v991_v43 }
 0x707   : > { %v3254_v1 = vmul.f32 %v1435_v11, %v3110_v36  ;;  %v1187_v52 = vmul.f32 %v1186_v55, %v1177_v6  ;;  %2149 = vpow2.f32 %v1001_v30 }
 0x708   : > { %v3263_v28 = vadd.f32 %v1426_v8, %v1188_v62 }
 0x709   : > { %v3265_v32 = vadd.f32 %v1425_v15, %v1187_v52  ;;  %v2140_v20 = vpop.eup %2139 }
 0x70a   : > { %v1473_v55 = vmul.f32 %v2136_v34, %v3263_v28  ;;  %v1230_v34 = vmul.f32 %v1228_v17, %v3119_v49 }
 0x70b   : > { %v1191_v51 = vpop.permute.xlu1 %1190  ;;  %v1079_v53 = vpop.permute.xlu0 %1078  ;;  %v1472_v2 = vmul.f32 %v2140_v20, %v3265_v32 }
 0x70c   : > { %v1089_v36 = vmul.f32 %v3107_v27, %v1079_v53  ;;  %v2142_v27 = vpop.eup %2141  ;;  %v1201_v23 = vmul.f32 %v1200_v0, %v1191_v51 }
 0x70d   : > { %v2144_v3 = vpop.eup %2143 }
 0x70e   : > { %v1470_v18 = vadd.f32 %v1468_v61, %v1089_v36  ;;  %v2146_v43 = vpop.eup %2145  ;;  %v3286_v52 = vadd.f32 %v1472_v2, %v1201_v23 }
 0x70f   : > { %v1195_v16 = vpop.permute.xlu1 %1194  ;;  %v1478_v22 = vpop.permute.xlu0 %1477 }
 0x710   : > { %v1202_v38 = vmul.f32 %v1200_v0, %v1195_v16  ;;  %v3271_v63 = vmul.f32 %v1478_v22, %v1470_v18  ;;  %v1515_v5 = vmul.f32 %v2138_v21, %v1470_v18  ;;  %v2148_v53 = vpop.eup %2147 }
 0x711   : > { %v1519_v36 = vmul.f32 %v2148_v53, %v3286_v52  ;;  %v2150_v61 = vpop.eup %2149 }
 0x712   : > { %v1475_v45 = vadd.f32 %v1473_v55, %v1202_v38  ;;  %v3277_v6 = vadd.f32 %v1515_v5, %v1103_v50 }
 0x714   : > { %v1209_v11 = vpop.permute.xlu1 %1208  ;;  %v1501_v19 = vpop.permute.xlu0 %1500  ;;  %v1520_v62 = vmul.f32 %v2142_v27, %v1475_v45  ;;  %v1562_v8 = vmul.f32 %v2144_v3, %v3277_v6  ;;  %v1270_v3 = vsel %vm489_vm0, %v3154_v48, 0.0 }
 0x715   : > { %v1216_v42 = vmul.f32 %v1214_v26, %v1209_v11  ;;  %v3284_v59 = vmul.f32 %v1501_v19, %v1475_v45  ;;  %v1299_v19 = vsel %vm489_vm0, %v3173_v37, 0.0 }
 0x716   : > { %v3288_v51 = vadd.f32 %v1562_v8, %v1117_v47 }
 0x717   : > { %v3291_v39 = vadd.f32 %v1520_v62, %v1216_v42 }
 0x718   : > { %1609 = vst.msk [vmem:[#allocation2] sm:$0xff] %vm489_vm0, %v3288_v51 }
 0x719   : > { %v1219_v33 = vpop.permute.xlu1 %1218  ;;  %v1205_v10 = vpop.permute.xlu0 %1204  ;;  %v1567_v4 = vmul.f32 %v2146_v43, %v3291_v39 }
 0x71a   : > { %v1215_v15 = vmul.f32 %v1214_v26, %v1205_v10  ;;  %v1229_v49 = vmul.f32 %v1228_v17, %v1219_v33 }
 0x71b   : > { %v3297_v21 = vadd.f32 %v1567_v4, %v1230_v34 }
 0x71c   : > { %v3299_v30 = vadd.f32 %v1519_v36, %v1215_v15 }
 0x71d   : > { %1612 = vst.msk [vmem:[#allocation3 + $0x8] sm:$0xff] %vm489_vm0, %v3297_v21 }
 0x71e   : > { %v1242_v0 = vpop.permute.xlu1 %1241  ;;  %v1566_v18 = vmul.f32 %v2150_v61, %v3299_v30 }
 0x71f   : > { %v1249_v50 = vmul.f32 %v1242_v0, %v3146_v29 }
 0x720   : > { %v3304_v20 = vadd.f32 %v1566_v18, %v1229_v49 }
 0x721   : > { %v1251_v27 = vsel %vm489_vm0, %v1249_v50, 0.0 }
 0x722   : > { %v1247_v16 = vpop.permute.xlu1 %1246  ;;  %1611 = vst.msk [vmem:[#allocation3] sm:$0xff] %vm489_vm0, %v3304_v20 }
 0x723   : > { %v1250_v22 = vmul.f32 %v1247_v16, %v3037_v46 }
 0x725   : > { %v1252_v38 = vsel %vm489_vm0, %v1250_v22, 0.0 }
 0x726   : > { %v1253_v55 = vadd.f32 %v1252_v38, %v1251_v27 }
 0x727   : > { %v1266_v5 = vpop.permute.xlu1 %1265 }
 0x728   : > { %v1254_v26 = vrot.slane %v1253_v55, 4  ;;  %v1269_v23 = vmul.f32 %v1266_v5, %v3193_v7 }
 0x72a   : > { %v1255_v2 = vadd.f32 %v1254_v26, %v1253_v55  ;;  %v1271_v29 = vsel %vm489_vm0, %v1269_v23, 0.0 }
 0x72b   : > { %v1272_v45 = vadd.f32 %v1271_v29, %v1270_v3 }
 0x72c   : > { %v1256_v17 = vrot.slane %v1255_v2, 2  ;;  %v1290_v47 = vpop.permute.xlu1 %1289 }
 0x72d   : > { %v1273_v11 = vrot.slane %v1272_v45, 4  ;;  %v1296_v46 = vmul.f32 %v1290_v47, %v3176_v35 }
 0x72e   : > { %v1257_v62 = vadd.f32 %v1256_v17, %v1255_v2 }
 0x72f   : > { %v1274_v8 = vadd.f32 %v1273_v11, %v1272_v45  ;;  %v1298_v43 = vsel %vm489_vm0, %v1296_v46, 0.0 }
 0x730   : > { %v1300_v48 = vadd.f32 %v1299_v19, %v1298_v43  ;;  %v1258_v34 = vrot.slane %v1257_v62, 1 }
 0x731   : > { %v1275_v42 = vrot.slane %v1274_v8, 2  ;;  %v1309_v53 = vpop.permute.xlu1 %1308 }
 0x732   : > { %v1301_v7 = vrot.slane %v1300_v48, 4  ;;  %v1315_v10 = vmul.f32 %v1309_v53, %v3207_v57  ;;  %v1259_v61 = vadd.f32 %v1258_v34, %v1257_v62  ;;  %v1345_v57 = vsel %vm489_vm0, %v3199_v54, 0.0 }
 0x733   : > { %v1276_v33 = vadd.f32 %v1275_v42, %v1274_v8 }
 0x734   : > { %v1302_v15 = vadd.f32 %v1301_v7, %v1300_v48  ;;  %v1317_v37 = vsel %vm489_vm0, %v1315_v10, 0.0 }
 0x735   : > { %v1277_v4 = vrot.slane %v1276_v33, 1  ;;  %v1313_v36 = vpop.permute.xlu1 %1312 }
 0x736   : > { %v1316_v35 = vmul.f32 %v1313_v36, %v3214_v12  ;;  %v1303_v50 = vrot.slane %v1302_v15, 2 }
 0x737   : > { %v1278_v49 = vadd.f32 %v1277_v4, %v1276_v33 }
 0x738   : > { %v1318_v0 = vsel %vm489_vm0, %v1316_v35, 0.0  ;;  %v1304_v55 = vadd.f32 %v1303_v50, %v1302_v15 }
 0x739   : > { %v1279_v18 = vadd.f32 %v1278_v49, %v1259_v61  ;;  %v1319_v16 = vadd.f32 %v1318_v0, %v1317_v37 }
 0x73a   : > { %v1341_v22 = vpop.permute.xlu1 %1340  ;;  %v1305_v45 = vrot.slane %v1304_v55, 1 }
 0x73b   : > { %v1320_v27 = vrot.slane %v1319_v16, 4  ;;  %v1344_v38 = vmul.f32 %v1341_v22, %v3074_v40  ;;  %v1365_v40 = vsel %vm489_vm0, %v3239_v44, 0.0 }
 0x73c   : > { %v1306_v8 = vadd.f32 %v1305_v45, %v1304_v55 }
 0x73d   : > { %v1321_v5 = vadd.f32 %v1320_v27, %v1319_v16  ;;  %v1346_v12 = vsel %vm489_vm0, %v1344_v38, 0.0 }
 0x73e   : > { %v1347_v3 = vadd.f32 %v1346_v12, %v1345_v57 }
 0x73f   : > { %v1322_v26 = vrot.slane %v1321_v5, 2  ;;  %v1356_v23 = vpop.permute.xlu1 %1355 }
 0x740   : > { %v1348_v2 = vrot.slane %v1347_v3, 4  ;;  %v1362_v29 = vmul.f32 %v1356_v23, %v3219_v56 }
 0x741   : > { %v1323_v17 = vadd.f32 %v1322_v26, %v1321_v5 }
 0x742   : > { %v1349_v47 = vadd.f32 %v1348_v2, %v1347_v3  ;;  %v1364_v11 = vsel %vm489_vm0, %v1362_v29, 0.0 }
 0x743   : > { %v1324_v46 = vrot.slane %v1323_v17, 1  ;;  %v1366_v54 = vadd.f32 %v1365_v40, %v1364_v11 }
 0x744   : > { %v1350_v19 = vrot.slane %v1349_v47, 2  ;;  %v1384_v62 = vpop.permute.xlu1 %1383 }
 0x745   : > { %v1325_v43 = vadd.f32 %v1324_v46, %v1323_v17  ;;  %v1367_v48 = vrot.slane %v1366_v54, 4  ;;  %v1390_v56 = vmul.f32 %v1384_v62, %v3237_v31  ;;  %v1411_v31 = vsel %vm489_vm0, %v3241_v14, 0.0 }
 0x746   : > { %v1351_v53 = vadd.f32 %v1350_v19, %v1349_v47 }
 0x747   : > { %v1326_v42 = vadd.f32 %v1325_v43, %v1306_v8  ;;  %v1368_v7 = vadd.f32 %v1367_v48, %v1366_v54  ;;  %v1392_v36 = vsel %vm489_vm0, %v1390_v56, 0.0 }
 0x748   : > { %v1388_v34 = vpop.permute.xlu1 %1387  ;;  %v1352_v15 = vrot.slane %v1351_v53, 1 }
 0x749   : > { %v1614_v33 = vsel %vm1613_vm8, %v1279_v18, %v1326_v42  ;;  %v1369_v10 = vrot.slane %v1368_v7, 2  ;;  %v1391_v4 = vmul.f32 %v1388_v34, %v3090_v9 }
 0x74a   : > { %v1353_v16 = vadd.f32 %v1352_v15, %v1351_v53 }
 0x74b   : > { %v1370_v44 = vadd.f32 %v1369_v10, %v1368_v7  ;;  %v1393_v35 = vsel %vm489_vm0, %v1391_v4, 0.0 }
 0x74c   : > { %v1394_v61 = vadd.f32 %v1393_v35, %v1392_v36 }
 0x74d   : > { %v1371_v49 = vrot.slane %v1370_v44, 1  ;;  %v1407_v37 = vpop.permute.xlu1 %1406 }
 0x74e   : > { %v1395_v0 = vrot.slane %v1394_v61, 4  ;;  %v1410_v50 = vmul.f32 %v1407_v37, %v3247_v25  ;;  %v1440_v25 = vsel %vm489_vm0, %v3254_v1, 0.0 }
 0x74f   : > { %v1372_v22 = vadd.f32 %v1371_v49, %v1370_v44 }
 0x750   : > { %v1396_v18 = vadd.f32 %v1395_v0, %v1394_v61  ;;  %v1412_v9 = vsel %vm489_vm0, %v1410_v50, 0.0  ;;  %v1506_v0 = vsel %vm489_vm0, %v3284_v59, 0.0 }
 0x751   : > { %v1373_v27 = vadd.f32 %v1372_v22, %v1353_v16  ;;  %v1413_v38 = vadd.f32 %v1412_v9, %v1411_v31 }
 0x752   : > { %v1397_v57 = vrot.slane %v1396_v18, 2  ;;  %v1431_v55 = vpop.permute.xlu1 %1430 }
 0x753   : > { %v1616_v5 = vsel %vm1615_vm9, %v1614_v33, %v1373_v27  ;;  %v1414_v12 = vrot.slane %v1413_v38, 4  ;;  %v1437_v3 = vmul.f32 %v1431_v55, %v3258_v41  ;;  %v1486_v33 = vsel %vm489_vm0, %v3271_v63, 0.0 }
 0x754   : > { %v1398_v26 = vadd.f32 %v1397_v57, %v1396_v18 }
 0x755   : > { %v1415_v23 = vadd.f32 %v1414_v12, %v1413_v38  ;;  %v1439_v2 = vsel %vm489_vm0, %v1437_v3, 0.0 }
 0x756   : > { %v1441_v14 = vadd.f32 %v1440_v25, %v1439_v2  ;;  %v1399_v47 = vrot.slane %v1398_v26, 1 }
 0x757   : > { %v1416_v29 = vrot.slane %v1415_v23, 2  ;;  %v1450_v45 = vpop.permute.xlu1 %1449 }
 0x758   : > { %v1442_v17 = vrot.slane %v1441_v14, 4  ;;  %v1456_v40 = vmul.f32 %v1450_v45, %v3265_v32  ;;  %v1400_v62 = vadd.f32 %v1399_v47, %v1398_v26 }
 0x759   : > { %v1417_v11 = vadd.f32 %v1416_v29, %v1415_v23 }
 0x75a   : > { %v1443_v54 = vadd.f32 %v1442_v17, %v1441_v14  ;;  %v1458_v1 = vsel %vm489_vm0, %v1456_v40, 0.0 }
 0x75b   : > { %v1418_v46 = vrot.slane %v1417_v11, 1  ;;  %v1454_v19 = vpop.permute.xlu1 %1453 }
 0x75c   : > { %v1457_v41 = vmul.f32 %v1454_v19, %v3263_v28  ;;  %v1444_v42 = vrot.slane %v1443_v54, 2 }
 0x75d   : > { %v1419_v8 = vadd.f32 %v1418_v46, %v1417_v11 }
 0x75e   : > { %v1459_v43 = vsel %vm489_vm0, %v1457_v41, 0.0  ;;  %v1445_v10 = vadd.f32 %v1444_v42, %v1443_v54 }
 0x75f   : > { %v1420_v48 = vadd.f32 %v1419_v8, %v1400_v62  ;;  %v1460_v53 = vadd.f32 %v1459_v43, %v1458_v1 }
 0x760   : > { %v1482_v7 = vpop.permute.xlu1 %1481  ;;  %v1446_v49 = vrot.slane %v1445_v10, 1 }
 0x761   : > { %v1618_v56 = vsel %vm1617_vm10, %v1616_v5, %v1420_v48  ;;  %v1461_v34 = vrot.slane %v1460_v53, 4  ;;  %v1485_v32 = vmul.f32 %v1482_v7, %v3126_v24  ;;  %v1544_v5 = vpop.permute.xlu0 %1543 }
 0x762   : > { %v1447_v18 = vadd.f32 %v1446_v49, %v1445_v10  ;;  %v1550_v29 = vmul.f32 %v1544_v5, %v3299_v30 }
 0x763   : > { %v1462_v28 = vadd.f32 %v1461_v34, %v1460_v53  ;;  %v1487_v4 = vsel %vm489_vm0, %v1485_v32, 0.0 }
 0x764   : > { %v1488_v15 = vadd.f32 %v1487_v4, %v1486_v33 }
 0x765   : > { %v1463_v44 = vrot.slane %v1462_v28, 2  ;;  %v1497_v36 = vpop.permute.xlu1 %1496  ;;  %v1576_v11 = vpop.permute.xlu0 %1575 }
 0x766   : > { %v1489_v35 = vrot.slane %v1488_v15, 4  ;;  %v1503_v61 = vmul.f32 %v1497_v36, %v3286_v52  ;;  %v1579_v62 = vmul.f32 %v1576_v11, %v3179_v13 }
 0x767   : > { %v1464_v37 = vadd.f32 %v1463_v44, %v1462_v28 }
 0x768   : > { %v1490_v50 = vadd.f32 %v1489_v35, %v1488_v15  ;;  %v1505_v24 = vsel %vm489_vm0, %v1503_v61, 0.0 }
 0x769   : > { %v1465_v16 = vrot.slane %v1464_v37, 1  ;;  %v1507_v63 = vadd.f32 %v1506_v0, %v1505_v24 }
 0x76a   : > { %v1491_v22 = vrot.slane %v1490_v50, 2  ;;  %v1525_v31 = vpop.permute.xlu1 %1524 }
 0x76b   : > { %v1466_v9 = vadd.f32 %v1465_v16, %v1464_v37  ;;  %v1508_v27 = vrot.slane %v1507_v63, 4  ;;  %v1531_v52 = vmul.f32 %v1525_v31, %v3277_v6 }
 0x76c   : > { %v1492_v57 = vadd.f32 %v1491_v22, %v1490_v50 }
 0x76d   : > { %v1467_v38 = vadd.f32 %v1466_v9, %v1447_v18  ;;  %v1509_v55 = vadd.f32 %v1508_v27, %v1507_v63  ;;  %v1533_v2 = vsel %vm489_vm0, %v1531_v52, 0.0  ;;  %v3513_v27 = vld [vmem:[#allocation25_spill] sm:$0xff] }
 0x76e   : > { %v1529_v12 = vpop.permute.xlu1 %1528  ;;  %v1493_v26 = vrot.slane %v1492_v57, 1 }
 0x76f   : > { %v1510_v3 = vrot.slane %v1509_v55, 2  ;;  %v1532_v59 = vmul.f32 %v1529_v12, %v3158_v60  ;;  %v1620_v25 = vsel %vm1619_vm11, %v1618_v56, %v1467_v38  ;;  %v1552_v60 = vsel %vm489_vm0, %v1550_v29, 0.0 }
 0x770   : > { %v1494_v46 = vadd.f32 %v1493_v26, %v1492_v57  ;;  %v1627_v38 = vadd.f32 %v3513_v27, %v2846_v58  ;;  %v3515_v58 = vld [vmem:[#allocation24_spill] sm:$0xff] }
 0x771   : > { %v1511_v23 = vadd.f32 %v1510_v3, %v1509_v55  ;;  %v1534_v14 = vsel %vm489_vm0, %v1532_v59, 0.0  ;;  %v1825_v55 = vld [vmem:[%s3514_s20] ss:$0 sm:$0xff] }
 0x772   : > { %v1535_v45 = vadd.f32 %v1534_v14, %v1533_v2  ;;  %v1635_v12 = vmul.f32 %v1825_v55, %v1627_v38 }
 0x773   : > { %v1512_v17 = vrot.slane %v1511_v23, 1  ;;  %v1548_v47 = vpop.permute.xlu1 %1547 }
 0x774   : > { %v1536_v40 = vrot.slane %v1535_v45, 4  ;;  %v1551_v6 = vmul.f32 %v1548_v47, %v3291_v39  ;;  %v1581_v39 = vsel %vm489_vm0, %v1579_v62, 0.0 }
 0x775   : > { %v1513_v54 = vadd.f32 %v1512_v17, %v1511_v23  ;;  %v3516_v23 = vld [vmem:[#allocation23_spill] sm:$0xff] }
 0x776   : > { %v1537_v19 = vadd.f32 %v1536_v40, %v1535_v45  ;;  %v1553_v41 = vsel %vm489_vm0, %v1551_v6, 0.0 }
 0x777   : > { %v1514_v8 = vadd.f32 %v1513_v54, %v1494_v46  ;;  %v1554_v1 = vadd.f32 %v1553_v41, %v1552_v60 }
 0x778   : > { %v1538_v30 = vrot.slane %v1537_v19, 2  ;;  %v1572_v43 = vpop.permute.xlu1 %1571 }
 0x779   : > { %v1555_v48 = vrot.slane %v1554_v1, 4  ;;  %v1578_v42 = vmul.f32 %v1572_v43, %v3288_v51  ;;  %v1622_v53 = vsel %vm1621_vm12, %v1620_v25, %v1514_v8 }
 0x77a   : > { %v1539_v7 = vadd.f32 %v1538_v30, %v1537_v19 }
 0x77b   : > { %v1556_v56 = vadd.f32 %v1555_v48, %v1554_v1  ;;  %v1580_v34 = vsel %vm489_vm0, %v1578_v42, 0.0 }
 0x77c   : > { %v1582_v32 = vadd.f32 %v1581_v39, %v1580_v34  ;;  %v1540_v4 = vrot.slane %v1539_v7, 1 }
 0x77d   : > { %v1557_v33 = vrot.slane %v1556_v56, 2  ;;  %v1591_v10 = vpop.permute.xlu1 %1590 }
 0x77e   : > { %v1583_v28 = vrot.slane %v1582_v32, 4  ;;  %v1597_v15 = vmul.f32 %v1591_v10, %v3304_v20  ;;  %v1541_v61 = vadd.f32 %v1540_v4, %v1539_v7 }
 0x77f   : > { %v1558_v13 = vadd.f32 %v1557_v33, %v1556_v56 }
 0x780   : > { %v1584_v36 = vadd.f32 %v1583_v28, %v1582_v32  ;;  %v1599_v37 = vsel %vm489_vm0, %v1597_v15, 0.0 }
 0x781   : > { %v1559_v44 = vrot.slane %v1558_v13, 1  ;;  %v1595_v35 = vpop.permute.xlu1 %1594 }
 0x782   : > { %v1598_v51 = vmul.f32 %v1595_v35, %v3297_v21  ;;  %v1585_v24 = vrot.slane %v1584_v36, 2 }
 0x783   : > { %v1560_v49 = vadd.f32 %v1559_v44, %v1558_v13 }
 0x784   : > { %v1600_v0 = vsel %vm489_vm0, %v1598_v51, 0.0  ;;  %v1586_v20 = vadd.f32 %v1585_v24, %v1584_v36 }
 0x785   : > { %v1561_v50 = vadd.f32 %v1560_v49, %v1541_v61  ;;  %v1601_v16 = vadd.f32 %v1600_v0, %v1599_v37 }
 0x786   : > { %v1587_v9 = vrot.slane %v1586_v20, 1 }
 0x787   : > { %v1602_v63 = vrot.slane %v1601_v16, 4  ;;  %v1624_v22 = vsel %vm1623_vm13, %v1622_v53, %v1561_v50 }
 0x788   : > { %v1588_v52 = vadd.f32 %v1587_v9, %v1586_v20 }
 0x789   : > { %v1603_v31 = vadd.f32 %v1602_v63, %v1601_v16 }
 0x78b   : > { %v1604_v18 = vrot.slane %v1603_v31, 2 }
 0x78d   : > { %v1605_v21 = vadd.f32 %v1604_v18, %v1603_v31 }
 0x78f   : > { %v1606_v57 = vrot.slane %v1605_v21, 1 }
 0x791   : > { %v1607_v5 = vadd.f32 %v1606_v57, %v1605_v21 }
 0x793   : > { %v1608_v3 = vadd.f32 %v1607_v5, %v1588_v52 }
 0x795   : > { %v1626_v59 = vsel %vm1625_vm14, %v1624_v22, %v1608_v3 }
 0x796   : > { %v1636_v25 = vadd.f32 %v1635_v12, %v1626_v59 }
 0x798   : > { %v1637_v26 = vmul.f32 %v1636_v25, %v3515_v58 }
 0x79a   : > { %v1638_v2 = vadd.f32 %v1637_v26, %v3516_v23 }
 0x79c   : > { %1639 = vst.msk [vmem:[%s2876_s3] sm:$0xff] %vm489_vm0, %v1638_v2 }
 0x79d   : > { %2334 = shalt.err (!%p2331_p5)
}
 0x79e   : > { %s2335_s12 = scalar_lea.hbm %s3385_s6, 128  ;;  %s2339_s7 = scalar_lea.hbm %s3518_s4, 512 }
 0x79f   : > { %p2336_p11 = scmp.ne.s32.totalorder %s3385_s6, %s2335_s12  ;;  %p2340_p12 = scmp.lt.u32.totalorder %s3385_s6, %s3518_s4 }
 0x7a0   : > { %p2341_p6 = scmp.lt.u32.totalorder %s2339_s7, %s2335_s12  ;;  %p2343_p8 = scmp.lt.u32.totalorder %s2335_s12, %s3385_s6 }
 0x7a1   : > { %p2337_p13 = pnand %p2336_p11, %p3519_p7 }
 0x7a2   : > { %p2342_p4 = por %p2341_p6, %p2340_p12 }
 0x7a3   : > { %p2338_p0 = pneg %p2337_p13 }
 0x7a4   : > { %p2344_p3 = por %p2343_p8, %p2342_p4 }
 0x7a6   : > { %p2345_p2 = pnand %p2344_p3, %p2338_p0 }
 0x7a8   : > { %2348 = shalt.err (!%p2345_p2)
}
 0x7a9   : > { %1886 = dma.vmem_to_hbm [thread:$0]  (%p3519_p7), %s3387_s15, 128, %s3385_s6, %s1641_s8  }
 0x7aa PF: > { %p1923_p9 = scmp.ge.s32.totalorder %s2431_s24, 2  ;;  %s1668_s25 = sand.u32 1, %s2403_s17  }
 0x7ab   : > { %p3520_p10 = scmp.ne.s32.totalorder %s3495_s13, 0  ;;  %s1669_s5 = scalar_lea.sflag [#allocation6], %s1668_s25 }
 0x7ad   : > { %p1909_p1 = pnand %p1923_p9, %p3520_p10 }
 0x7af   : > { %2398 = dma.done.wait (!%p1909_p1), %s1669_s5, 128  }
 0x7b0   : > { %2400 = vsyncadd (!%p1909_p1), %s1669_s5, 4294967168  ;;  %s30_s24 = sadd.s32 1, %s2431_s24   ;;  %s3521_s17 = smov %s2407_s18 }
 0x7b1   : > { %p27_p5 = scmp.ge.s32.totalorder %s30_s24, 6   ;;  %s3522_s18 = smov %s2411_s19 }
 0x7b2   : > { %s3523_s19 = smov %s2744_s16  ;;  %s3524_s20 = smov %s2423_s22 }
 0x7b3   : > { %s3525_s21 = smov %s2427_s23  ;;  %s3526_s22 = smov %s3529_s11 }
 0x7b4   : > { %s3527_s23 = smov %s3533_s30  ;;  %29 = sbr.rel (!%p27_p5) target bundleno = 21 (0x15), region = 133 }
 0x7bb   :  { %1674 = vsyncpa [#allocation5], 1 }
 0x7bc   :  { %1676 = vsyncpa [#allocation5 + $0x1], 1 }
 0x7bd   :  { %1677 = vsyncpa [#allocation8], 1 }
 0x7be   :  { %1678 = vsyncpa [#allocation11], 1 }
 0x7bf   :  { %1679 = vsyncpa [#allocation14], 1 }
 0x7c0   :  { %1680 = vsyncpa [#allocation6], 1 }
 0x7c1   :  { %1682 = vsyncpa [#allocation6 + $0x1], 1 }

</bundles_post_ra>
